<compile_context>
chip_gen: v6e
topology: v6e:2x2x1
jax: 0.10.0
libtpu: 0.0.40
codegen_flags: <defaults>
</compile_context>

<pallas_src>
import functools
import math

import jax
import jax.numpy as jnp
from jax import lax
from jax.experimental import pallas as pl
from jax.experimental.pallas import tpu as pltpu

# ----------------------------- sizes -----------------------------------------
B = 8                      # batch
D_CAT, D_CONT = 4, 12      # categorical / continuous input widths
D_IN = D_CAT + D_CONT      # 16 == dim of rec_data and of the decoder output
H_ENC = 32                 # autoencoder hidden width
L_ENC = 2                  # bottleneck (encoding) dim
D_Z = L_ENC + 2            # latent dim: [encoded, rel_ed, rel_ed]
H_EST = 16                 # estimator hidden width
K_MIX = 3                  # number of GMM mixtures
EPS = 1e-8                 # matches torch.FloatTensor([1e-08])
SIG_REG = 1e-3             # diagonal regularization for the inverse/logdet path only
                           # (Sigma is exactly singular by construction -> needs real reg)
DET_FLOOR = (SIG_REG ** D_Z) * 1e-2   # pure NaN guard; PSD+reg guarantees det >= SIG_REG^4
LOG_2PI = math.log(2.0 * math.pi)

# --------------------- packed parameter slab layout ---------------------------
# ONE (32, 128) f32 slab (16 KiB), blocks packed side-by-side along lanes.
W_ROWS, W_COLS = 32, 128
POS = {                      # name -> (row offset, lane offset)
    "we1": (0, 0),           # (D_IN,  H_ENC)
    "wd1": (16, 0),          # (L_ENC, H_ENC)
    "be1": (18, 0),          # (1, H_ENC)
    "bd1": (19, 0),          # (1, H_ENC)
    "ws1": (20, 0),          # (D_Z, H_EST)
    "bs1": (24, 0),          # (1, H_EST)
    "bd2": (25, 0),          # (1, D_IN)
    "bs2": (26, 0),          # (1, K_MIX)
    "be2": (27, 0),          # (1, L_ENC)
    "wd2": (0, 32),          # (H_ENC, D_IN)
    "we2": (0, 48),          # (H_ENC, L_ENC)
    "ws2": (0, 50),          # (H_EST, K_MIX)
}

# ------------------------ packed output slab layout ----------------------------
OUT_COLS = 128
OUT_ROWS = 16
# rows 0..B-1   : [energy | gamma(K) | cos_sim | latent(D_Z) | zeros]
# rows B..B+K-1 : [phi | mu(D_Z) | sigma_flat(D_Z*D_Z) | zeros]
PS_W = 1 + K_MIX + 1 + D_Z
GMM_W = 1 + D_Z + D_Z * D_Z
F_W = D_Z * D_Z + D_Z + 1          # fused feature width: [zz | z | 1]


def _wslice(w_ref, name, rows, cols):
    r0, c0 = POS[name]
    return w_ref[r0:r0 + rows, c0:c0 + cols]


# ------------------------------ fused kernel ----------------------------------
def _dagmm_kernel(xcat_ref, xcont_ref, rec_ref, w_ref, out_ref):
    f32 = jnp.float32

    # ---- inputs: in-kernel lane concat (no wrapper-side XLA concat) ------------
    x = jnp.concatenate([xcat_ref[...], xcont_ref[...]], axis=1)        # (B, D_IN)
    rec = rec_ref[...]                                                  # (B, D_IN)

    # ---- statically sliced packed parameters ----------------------------------
    we1 = _wslice(w_ref, "we1", D_IN, H_ENC)
    be1 = _wslice(w_ref, "be1", 1, H_ENC)
    we2 = _wslice(w_ref, "we2", H_ENC, L_ENC)
    be2 = _wslice(w_ref, "be2", 1, L_ENC)
    wd1 = _wslice(w_ref, "wd1", L_ENC, H_ENC)
    bd1 = _wslice(w_ref, "bd1", 1, H_ENC)
    wd2 = _wslice(w_ref, "wd2", H_ENC, D_IN)
    bd2 = _wslice(w_ref, "bd2", 1, D_IN)
    ws1 = _wslice(w_ref, "ws1", D_Z, H_EST)
    bs1 = _wslice(w_ref, "bs1", 1, H_EST)
    ws2 = _wslice(w_ref, "ws2", H_EST, K_MIX)
    bs2 = _wslice(w_ref, "bs2", 1, K_MIX)

    # ---- compressor.encode / compressor.decode ---------------------------------
    h = jnp.tanh(jnp.dot(x, we1, preferred_element_type=f32) + be1)
    enc = jnp.dot(h, we2, preferred_element_type=f32) + be2              # (B, L_ENC)
    hd = jnp.tanh(jnp.dot(enc, wd1, preferred_element_type=f32) + bd1)
    dec = jnp.dot(hd, wd2, preferred_element_type=f32) + bd2             # (B, D_IN)

    # ---- relative euclidean distance / cosine similarity -----------------------
    d_rd = rec - dec
    num2 = jnp.sum(d_rd * d_rd, axis=1, keepdims=True)
    den2 = jnp.sum(rec * rec, axis=1, keepdims=True)
    rel_ed = jnp.sqrt(num2) * lax.rsqrt(jnp.maximum(den2, EPS * EPS))    # (B, 1)
    dot_pr = jnp.sum(rec * dec, axis=1, keepdims=True)
    dn2 = jnp.sum(dec * dec, axis=1, keepdims=True)
    cos = dot_pr * lax.rsqrt(jnp.maximum(den2 * dn2, EPS * EPS))         # (B, 1)

    # latent_vectors = cat([encoded, rel_ed, rel_ed], 1)  (reference bug preserved)
    z = jnp.concatenate([enc, rel_ed, rel_ed], axis=1)                   # (B, D_Z)

    # ---- estimator: MLP + softmax (exact normalizer: feeds the GMM stats) ------
    he = jnp.tanh(jnp.dot(z, ws1, preferred_element_type=f32) + bs1)
    logits = jnp.dot(he, ws2, preferred_element_type=f32) + bs2
    lmax = jnp.max(logits, axis=1, keepdims=True)
    ex = jnp.exp(logits - lmax)
    gamma = ex / jnp.sum(ex, axis=1, keepdims=True)                      # (B, K)

    # ---- gmm._update_mixtures_parameters: ONE fused gamma^T einsum -------------
    ones_b = jnp.ones((B, 1), f32)
    # zz[b, i*D_Z+j] = z[b,i]*z[b,j]
    zz = jnp.concatenate([z[:, i:i + 1] * z for i in range(D_Z)], axis=1)     # (B, 16)
    feat = jnp.concatenate([zz, z, ones_b], axis=1)                            # (B, 21)
    S = jnp.einsum('bk,bf->kf', gamma, feat, preferred_element_type=f32)       # (K, 21)
    S2 = S[:, 0:D_Z * D_Z]                                                     # (K, 16)
    S1 = S[:, D_Z * D_Z:D_Z * D_Z + D_Z]                                       # (K, D_Z)
    sg = S[:, D_Z * D_Z + D_Z:F_W]                                             # (K, 1)

    inv_sg = 1.0 / jnp.maximum(sg, EPS)                 # EXACT (keeps Sigma PSD)
    mu = S1 * inv_sg                                                            # (K, D_Z)
    phi = sg * (1.0 / B)                                                        # (K, 1)
    mumu = jnp.concatenate([mu[:, i:i + 1] * mu for i in range(D_Z)], axis=1)   # (K, 16)
    sigma_flat = S2 * inv_sg - mumu                                             # (K, 16)

    # ---- regularized (K, 4x4) inverse + logdet: closed-form cofactor/adjugate --
    lane_sq = lax.broadcasted_iota(jnp.int32, (1, D_Z * D_Z), 1)
    eye_flat = ((lane_sq % (D_Z + 1)) == 0).astype(f32)
    sig_reg = sigma_flat + SIG_REG * eye_flat                                   # (K, 16)

    a = [[sig_reg[:, i * D_Z + j:i * D_Z + j + 1] for j in range(D_Z)]
         for i in range(D_Z)]                                                   # 4x4 of (K,1)

    s0 = a[0][0] * a[1][1] - a[1][0] * a[0][1]
    s1 = a[0][0] * a[1][2] - a[1][0] * a[0][2]
    s2 = a[0][0] * a[1][3] - a[1][0] * a[0][3]
    s3 = a[0][1] * a[1][2] - a[1][1] * a[0][2]
    s4 = a[0][1] * a[1][3] - a[1][1] * a[0][3]
    s5 = a[0][2] * a[1][3] - a[1][2] * a[0][3]

    c5 = a[2][2] * a[3][3] - a[3][2] * a[2][3]
    c4 = a[2][1] * a[3][3] - a[3][1] * a[2][3]
    c3 = a[2][1] * a[3][2] - a[3][1] * a[2][2]
    c2 = a[2][0] * a[3][3] - a[3][0] * a[2][3]
    c1 = a[2][0] * a[3][2] - a[3][0] * a[2][2]
    c0 = a[2][0] * a[3][1] - a[3][0] * a[2][1]

    det = s0 * c5 - s1 * c4 + s2 * c3 + s3 * c2 - s4 * c1 + s5 * c0             # (K, 1)
    det = jnp.maximum(det, DET_FLOOR)            # PSD+reg => det >= SIG_REG^4 ; NaN guard
    logdet = jnp.log(det)
    invdet = 1.0 / det

    b = [[None] * D_Z for _ in range(D_Z)]
    b[0][0] = ( a[1][1] * c5 - a[1][2] * c4 + a[1][3] * c3) * invdet
    b[0][1] = (-a[0][1] * c5 + a[0][2] * c4 - a[0][3] * c3) * invdet
    b[0][2] = ( a[3][1] * s5 - a[3][2] * s4 + a[3][3] * s3) * invdet
    b[0][3] = (-a[2][1] * s5 + a[2][2] * s4 - a[2][3] * s3) * invdet
    b[1][0] = (-a[1][0] * c5 + a[1][2] * c2 - a[1][3] * c1) * invdet
    b[1][1] = ( a[0][0] * c5 - a[0][2] * c2 + a[0][3] * c1) * invdet
    b[1][2] = (-a[3][0] * s5 + a[3][2] * s2 - a[3][3] * s1) * invdet
    b[1][3] = ( a[2][0] * s5 - a[2][2] * s2 + a[2][3] * s1) * invdet
    b[2][0] = ( a[1][0] * c4 - a[1][1] * c2 + a[1][3] * c0) * invdet
    b[2][1] = (-a[0][0] * c4 + a[0][1] * c2 - a[0][3] * c0) * invdet
    b[2][2] = ( a[3][0] * s4 - a[3][1] * s2 + a[3][3] * s0) * invdet
    b[2][3] = (-a[2][0] * s4 + a[2][1] * s2 - a[2][3] * s0) * invdet
    b[3][0] = (-a[1][0] * c3 + a[1][1] * c1 - a[1][2] * c0) * invdet
    b[3][1] = ( a[0][0] * c3 - a[0][1] * c1 + a[0][2] * c0) * invdet
    b[3][2] = (-a[3][0] * s3 + a[3][1] * s1 - a[3][2] * s0) * invdet
    b[3][3] = ( a[2][0] * s3 - a[2][1] * s1 + a[2][2] * s0) * invdet

    sinv_flat = jnp.concatenate([b[i][j] for i in range(D_Z) for j in range(D_Z)],
                                axis=1)                                          # (K, 16)

    # ---- energy: -log sum_k phi_k N(z; mu_k, Sigma_k), single MXU op -----------
    # lp[b,k] = -0.5 z^T Sinv_k z + (Sinv_k mu_k).z + (logcoef_k - 0.5 mu_k^T Sinv_k mu_k)
    mu_c = [mu[:, i:i + 1] for i in range(D_Z)]
    v_c = [sum(b[j][i] * mu_c[i] for i in range(D_Z)) for j in range(D_Z)]
    v = jnp.concatenate(v_c, axis=1)                                             # (K, D_Z)
    c_q = sum(v_c[j] * mu_c[j] for j in range(D_Z))                              # (K, 1)
    logcoef = jnp.log(jnp.maximum(phi, 1e-12)) - 0.5 * (D_Z * LOG_2PI + logdet)  # (K, 1)

    coef = jnp.concatenate([-0.5 * sinv_flat, v, logcoef - 0.5 * c_q], axis=1)   # (K, 21)
    lp = jnp.einsum('bf,kf->bk', feat, coef, preferred_element_type=f32)         # (B, K)
    lpmax = jnp.max(lp, axis=1, keepdims=True)
    lse = lpmax + jnp.log(jnp.sum(jnp.exp(lp - lpmax), axis=1, keepdims=True))
    energy = -lse                                                                # (B, 1)

    # ---- output: two aligned (8,128) full-vreg stores ---------------------------
    per_sample = jnp.concatenate(
        [energy, gamma, cos, z, jnp.zeros((B, OUT_COLS - PS_W), f32)], axis=1)       # (8, 128)
    gmm_rows = jnp.concatenate(
        [phi, mu, sigma_flat, jnp.zeros((K_MIX, OUT_COLS - GMM_W), f32)], axis=1)    # (K, 128)
    gmm_block = jnp.concatenate(
        [gmm_rows, jnp.zeros((B - K_MIX, OUT_COLS), f32)], axis=0)                   # (8, 128)
    out_ref[0:B, :] = per_sample
    out_ref[B:2 * B, :] = gmm_block


# -------------------------------- wrapper --------------------------------------
_VMEM = functools.partial(pl.BlockSpec, memory_space=pltpu.MemorySpace.VMEM)


def dagmm_forward(x_cat, x_cont, rec_data, w_slab):
    slab = pl.pallas_call(
        _dagmm_kernel,
        out_shape=jax.ShapeDtypeStruct((OUT_ROWS, OUT_COLS), jnp.float32),
        in_specs=[_VMEM(), _VMEM(), _VMEM(), _VMEM()],
        out_specs=_VMEM(),
    )(x_cat.astype(jnp.float32), x_cont.astype(jnp.float32),
      rec_data.astype(jnp.float32), w_slab)

    # cheap slice-unpacking of the single output slab
    energy = slab[:B, 0:1]
    gamma = slab[:B, 1:1 + K_MIX]
    cos_sim = slab[:B, 1 + K_MIX:2 + K_MIX]
    latent = slab[:B, 2 + K_MIX:2 + K_MIX + D_Z]
    phi = slab[B:B + K_MIX, 0]
    mu = slab[B:B + K_MIX, 1:1 + D_Z]
    sigma = slab[B:B + K_MIX, 1 + D_Z:1 + D_Z + D_Z * D_Z].reshape(K_MIX, D_Z, D_Z)
    return energy, gamma, cos_sim, (latent, phi, mu, sigma)


# ------------------------ deterministic parameters ------------------------------
def init_params(key):
    ks = jax.random.split(key, 6)

    def w(k, shape):
        return (jax.random.normal(k, shape, jnp.float32)
                / jnp.sqrt(jnp.float32(shape[0]))).astype(jnp.float32)

    we1 = w(ks[0], (D_IN, H_ENC));  be1 = jnp.zeros((1, H_ENC), jnp.float32)
    we2 = w(ks[1], (H_ENC, L_ENC)); be2 = jnp.zeros((1, L_ENC), jnp.float32)
    wd1 = w(ks[2], (L_ENC, H_ENC)); bd1 = jnp.zeros((1, H_ENC), jnp.float32)
    wd2 = w(ks[3], (H_ENC, D_IN));  bd2 = jnp.zeros((1, D_IN), jnp.float32)
    ws1 = w(ks[4], (D_Z, H_EST));   bs1 = jnp.zeros((1, H_EST), jnp.float32)
    ws2 = w(ks[5], (H_EST, K_MIX)); bs2 = jnp.zeros((1, K_MIX), jnp.float32)
    return (we1, be1, we2, be2, wd1, bd1, wd2, bd2, ws1, bs1, ws2, bs2)


def pack_params(params):
    """Pack the 12 weight/bias arrays into one dense (32, 128) f32 slab (done once)."""
    (we1, be1, we2, be2, wd1, bd1, wd2, bd2, ws1, bs1, ws2, bs2) = params
    slab = jnp.zeros((W_ROWS, W_COLS), jnp.float32)
    for name, arr in (("we1", we1), ("be1", be1), ("we2", we2), ("be2", be2),
                      ("wd1", wd1), ("bd1", bd1), ("wd2", wd2), ("bd2", bd2),
                      ("ws1", ws1), ("bs1", bs1), ("ws2", ws2), ("bs2", bs2)):
        r0, c0 = POS[name]
        r, c = arr.shape
        slab = slab.at[r0:r0 + r, c0:c0 + c].set(arr)
    return slab


if __name__ == "__main__":
    key = jax.random.PRNGKey(0)
    kx, kc, kp = jax.random.split(key, 3)
    x_cat = jax.random.normal(kx, (B, D_CAT), jnp.float32)
    x_cont = jax.random.normal(kc, (B, D_CONT), jnp.float32)
    rec_data = jnp.concatenate([x_cat, x_cont], axis=1)      # reconstruction target

    params = init_params(kp)
    w_slab = pack_params(params)                             # packed once, off the hot path

    fwd = jax.jit(dagmm_forward)
    energy, gamma, cos_sim, (latent, phi, mu, sigma) = fwd(x_cat, x_cont, rec_data, w_slab)
    jax.block_until_ready((energy, gamma, cos_sim, latent, phi, mu, sigma))

    assert energy.shape == (B, 1)
    assert gamma.shape == (B, K_MIX)
    assert cos_sim.shape == (B, 1)
    assert latent.shape == (B, D_Z)
    assert phi.shape == (K_MIX,)
    assert mu.shape == (K_MIX, D_Z) and sigma.shape == (K_MIX, D_Z, D_Z)
    assert bool(jnp.all(jnp.isfinite(energy)))
    assert bool(jnp.all(jnp.isfinite(gamma)))
    assert bool(jnp.all(jnp.isfinite(mu))) and bool(jnp.all(jnp.isfinite(sigma)))
    print("KERNEL_OK")
</pallas_src>

<mosaic_0001>
module attributes {stable_mosaic.version = 11 : i64} {
  func.func @_dagmm_kernel(%arg0: memref<8x4xf32, #tpu.memory_space<vmem>>, %arg1: memref<8x12xf32, #tpu.memory_space<vmem>>, %arg2: memref<8x16xf32, #tpu.memory_space<vmem>>, %arg3: memref<32x128xf32, #tpu.memory_space<vmem>>, %arg4: memref<16x128xf32, #tpu.memory_space<vmem>>) attributes {dimension_semantics = [], scalar_prefetch = 0 : i64, scratch_operands = 0 : i64, tpu.core_type = #tpu.core_type<tc>} {
    %c0 = arith.constant 0 : index
    %c0_0 = arith.constant 0 : index
    %0 = vector.load %arg0[%c0, %c0_0] : memref<8x4xf32, #tpu.memory_space<vmem>>, vector<8x4xf32>
    %c0_1 = arith.constant 0 : index
    %c0_2 = arith.constant 0 : index
    %1 = vector.load %arg1[%c0_1, %c0_2] : memref<8x12xf32, #tpu.memory_space<vmem>>, vector<8x12xf32>
    %2 = tpu.concatenate %0, %1 in 1 : vector<8x4xf32>, vector<8x12xf32> -> vector<8x16xf32>
    %c0_3 = arith.constant 0 : index
    %c0_4 = arith.constant 0 : index
    %3 = vector.load %arg2[%c0_3, %c0_4] : memref<8x16xf32, #tpu.memory_space<vmem>>, vector<8x16xf32>
    %c0_5 = arith.constant 0 : index
    %c0_6 = arith.constant 0 : index
    %4 = vector.load %arg3[%c0_5, %c0_6] : memref<32x128xf32, #tpu.memory_space<vmem>>, vector<16x32xf32>
    %c18 = arith.constant 18 : index
    %c0_7 = arith.constant 0 : index
    %5 = vector.load %arg3[%c18, %c0_7] : memref<32x128xf32, #tpu.memory_space<vmem>>, vector<1x32xf32>
    %c0_8 = arith.constant 0 : index
    %c48 = arith.constant 48 : index
    %6 = vector.load %arg3[%c0_8, %c48] : memref<32x128xf32, #tpu.memory_space<vmem>>, vector<32x2xf32>
    %c27 = arith.constant 27 : index
    %c0_9 = arith.constant 0 : index
    %7 = vector.load %arg3[%c27, %c0_9] : memref<32x128xf32, #tpu.memory_space<vmem>>, vector<1x2xf32>
    %c16 = arith.constant 16 : index
    %c0_10 = arith.constant 0 : index
    %8 = vector.load %arg3[%c16, %c0_10] : memref<32x128xf32, #tpu.memory_space<vmem>>, vector<2x32xf32>
    %c19 = arith.constant 19 : index
    %c0_11 = arith.constant 0 : index
    %9 = vector.load %arg3[%c19, %c0_11] : memref<32x128xf32, #tpu.memory_space<vmem>>, vector<1x32xf32>
    %c0_12 = arith.constant 0 : index
    %c32 = arith.constant 32 : index
    %10 = vector.load %arg3[%c0_12, %c32] : memref<32x128xf32, #tpu.memory_space<vmem>>, vector<32x16xf32>
    %c25 = arith.constant 25 : index
    %c0_13 = arith.constant 0 : index
    %11 = vector.load %arg3[%c25, %c0_13] : memref<32x128xf32, #tpu.memory_space<vmem>>, vector<1x16xf32>
    %c20 = arith.constant 20 : index
    %c0_14 = arith.constant 0 : index
    %12 = vector.load %arg3[%c20, %c0_14] : memref<32x128xf32, #tpu.memory_space<vmem>>, vector<4x16xf32>
    %c24 = arith.constant 24 : index
    %c0_15 = arith.constant 0 : index
    %13 = vector.load %arg3[%c24, %c0_15] : memref<32x128xf32, #tpu.memory_space<vmem>>, vector<1x16xf32>
    %c0_16 = arith.constant 0 : index
    %c50 = arith.constant 50 : index
    %14 = vector.load %arg3[%c0_16, %c50] : memref<32x128xf32, #tpu.memory_space<vmem>>, vector<16x3xf32>
    %c26 = arith.constant 26 : index
    %c0_17 = arith.constant 0 : index
    %15 = vector.load %arg3[%c26, %c0_17] : memref<32x128xf32, #tpu.memory_space<vmem>>, vector<1x3xf32>
    %cst = arith.constant dense<0.000000e+00> : vector<8x32xf32>
    %16 = tpu.matmul %2, %4, %cst {dimension_numbers = #tpu.dot_dimension_numbers<[1], [0], [0], [1], [0, 0, 1, 1], [], []>} : vector<8x16xf32>, vector<16x32xf32>, vector<8x32xf32> -> vector<8x32xf32>
    %17 = vector.broadcast %5 : vector<1x32xf32> to vector<8x32xf32>
    %18 = arith.addf %16, %17 : vector<8x32xf32>
    %19 = math.tanh %18 : vector<8x32xf32>
    %cst_18 = arith.constant dense<0.000000e+00> : vector<8x2xf32>
    %20 = tpu.matmul %19, %6, %cst_18 {dimension_numbers = #tpu.dot_dimension_numbers<[1], [0], [0], [1], [0, 0, 1, 1], [], []>} : vector<8x32xf32>, vector<32x2xf32>, vector<8x2xf32> -> vector<8x2xf32>
    %21 = vector.broadcast %7 : vector<1x2xf32> to vector<8x2xf32>
    %22 = arith.addf %20, %21 : vector<8x2xf32>
    %cst_19 = arith.constant dense<0.000000e+00> : vector<8x32xf32>
    %23 = tpu.matmul %22, %8, %cst_19 {dimension_numbers = #tpu.dot_dimension_numbers<[1], [0], [0], [1], [0, 0, 1, 1], [], []>} : vector<8x2xf32>, vector<2x32xf32>, vector<8x32xf32> -> vector<8x32xf32>
    %24 = vector.broadcast %9 : vector<1x32xf32> to vector<8x32xf32>
    %25 = arith.addf %23, %24 : vector<8x32xf32>
    %26 = math.tanh %25 : vector<8x32xf32>
    %cst_20 = arith.constant dense<0.000000e+00> : vector<8x16xf32>
    %27 = tpu.matmul %26, %10, %cst_20 {dimension_numbers = #tpu.dot_dimension_numbers<[1], [0], [0], [1], [0, 0, 1, 1], [], []>} : vector<8x32xf32>, vector<32x16xf32>, vector<8x16xf32> -> vector<8x16xf32>
    %28 = vector.broadcast %11 : vector<1x16xf32> to vector<8x16xf32>
    %29 = arith.addf %27, %28 : vector<8x16xf32>
    %30 = arith.subf %3, %29 : vector<8x16xf32>
    %31 = arith.mulf %30, %30 : vector<8x16xf32>
    %cst_21 = arith.constant dense<0.000000e+00> : vector<8xf32>
    %32 = vector.multi_reduction <add>, %31, %cst_21 [1] : vector<8x16xf32> to vector<8xf32>
    %33 = vector.shape_cast %32 : vector<8xf32> to vector<8x1xf32>
    %34 = arith.mulf %3, %3 : vector<8x16xf32>
    %cst_22 = arith.constant dense<0.000000e+00> : vector<8xf32>
    %35 = vector.multi_reduction <add>, %34, %cst_22 [1] : vector<8x16xf32> to vector<8xf32>
    %36 = vector.shape_cast %35 : vector<8xf32> to vector<8x1xf32>
    %37 = math.sqrt %33 : vector<8x1xf32>
    %cst_23 = arith.constant 1.000000e-16 : f32
    %38 = vector.broadcast %cst_23 : f32 to vector<8x1xf32>
    %39 = arith.maximumf %36, %38 : vector<8x1xf32>
    %40 = math.rsqrt %39 : vector<8x1xf32>
    %41 = arith.mulf %37, %40 : vector<8x1xf32>
    %42 = arith.mulf %3, %29 : vector<8x16xf32>
    %cst_24 = arith.constant dense<0.000000e+00> : vector<8xf32>
    %43 = vector.multi_reduction <add>, %42, %cst_24 [1] : vector<8x16xf32> to vector<8xf32>
    %44 = vector.shape_cast %43 : vector<8xf32> to vector<8x1xf32>
    %45 = arith.mulf %29, %29 : vector<8x16xf32>
    %cst_25 = arith.constant dense<0.000000e+00> : vector<8xf32>
    %46 = vector.multi_reduction <add>, %45, %cst_25 [1] : vector<8x16xf32> to vector<8xf32>
    %47 = vector.shape_cast %46 : vector<8xf32> to vector<8x1xf32>
    %48 = arith.mulf %36, %47 : vector<8x1xf32>
    %cst_26 = arith.constant 1.000000e-16 : f32
    %49 = vector.broadcast %cst_26 : f32 to vector<8x1xf32>
    %50 = arith.maximumf %48, %49 : vector<8x1xf32>
    %51 = math.rsqrt %50 : vector<8x1xf32>
    %52 = arith.mulf %44, %51 : vector<8x1xf32>
    %53 = tpu.concatenate %22, %41, %41 in 1 : vector<8x2xf32>, vector<8x1xf32>, vector<8x1xf32> -> vector<8x4xf32>
    %cst_27 = arith.constant dense<0.000000e+00> : vector<8x16xf32>
    %54 = tpu.matmul %53, %12, %cst_27 {dimension_numbers = #tpu.dot_dimension_numbers<[1], [0], [0], [1], [0, 0, 1, 1], [], []>} : vector<8x4xf32>, vector<4x16xf32>, vector<8x16xf32> -> vector<8x16xf32>
    %55 = vector.broadcast %13 : vector<1x16xf32> to vector<8x16xf32>
    %56 = arith.addf %54, %55 : vector<8x16xf32>
    %57 = math.tanh %56 : vector<8x16xf32>
    %cst_28 = arith.constant dense<0.000000e+00> : vector<8x3xf32>
    %58 = tpu.matmul %57, %14, %cst_28 {dimension_numbers = #tpu.dot_dimension_numbers<[1], [0], [0], [1], [0, 0, 1, 1], [], []>} : vector<8x16xf32>, vector<16x3xf32>, vector<8x3xf32> -> vector<8x3xf32>
    %59 = vector.broadcast %15 : vector<1x3xf32> to vector<8x3xf32>
    %60 = arith.addf %58, %59 : vector<8x3xf32>
    %cst_29 = arith.constant dense<0xFF800000> : vector<8xf32>
    %61 = vector.multi_reduction <maximumf>, %60, %cst_29 [1] : vector<8x3xf32> to vector<8xf32>
    %62 = vector.shape_cast %61 : vector<8xf32> to vector<8x1xf32>
    %63 = vector.broadcast %62 : vector<8x1xf32> to vector<8x3xf32>
    %64 = arith.subf %60, %63 : vector<8x3xf32>
    %65 = math.exp %64 : vector<8x3xf32>
    %cst_30 = arith.constant dense<0.000000e+00> : vector<8xf32>
    %66 = vector.multi_reduction <add>, %65, %cst_30 [1] : vector<8x3xf32> to vector<8xf32>
    %67 = vector.shape_cast %66 : vector<8xf32> to vector<8x1xf32>
    %68 = vector.broadcast %67 : vector<8x1xf32> to vector<8x3xf32>
    %69 = arith.divf %65, %68 : vector<8x3xf32>
    %cst_31 = arith.constant 1.000000e+00 : f32
    %70 = vector.broadcast %cst_31 : f32 to vector<8x1xf32>
    %71 = vector.extract_strided_slice %53 {offsets = [0, 0], sizes = [8, 1], strides = [1, 1]} : vector<8x4xf32> to vector<8x1xf32>
    %72 = vector.broadcast %71 : vector<8x1xf32> to vector<8x4xf32>
    %73 = arith.mulf %72, %53 : vector<8x4xf32>
    %74 = vector.extract_strided_slice %53 {offsets = [0, 1], sizes = [8, 1], strides = [1, 1]} : vector<8x4xf32> to vector<8x1xf32>
    %75 = vector.broadcast %74 : vector<8x1xf32> to vector<8x4xf32>
    %76 = arith.mulf %75, %53 : vector<8x4xf32>
    %77 = vector.extract_strided_slice %53 {offsets = [0, 2], sizes = [8, 1], strides = [1, 1]} : vector<8x4xf32> to vector<8x1xf32>
    %78 = vector.broadcast %77 : vector<8x1xf32> to vector<8x4xf32>
    %79 = arith.mulf %78, %53 : vector<8x4xf32>
    %80 = vector.extract_strided_slice %53 {offsets = [0, 3], sizes = [8, 1], strides = [1, 1]} : vector<8x4xf32> to vector<8x1xf32>
    %81 = vector.broadcast %80 : vector<8x1xf32> to vector<8x4xf32>
    %82 = arith.mulf %81, %53 : vector<8x4xf32>
    %83 = tpu.concatenate %73, %76, %79, %82 in 1 : vector<8x4xf32>, vector<8x4xf32>, vector<8x4xf32>, vector<8x4xf32> -> vector<8x16xf32>
    %84 = tpu.concatenate %83, %53, %70 in 1 : vector<8x16xf32>, vector<8x4xf32>, vector<8x1xf32> -> vector<8x21xf32>
    "tpu.trace_start"() <{level = 10 : i32, message = "bk,bf->kf"}> : () -> ()
    %cst_32 = arith.constant dense<0.000000e+00> : vector<3x21xf32>
    %85 = tpu.matmul %69, %84, %cst_32 {dimension_numbers = #tpu.dot_dimension_numbers<[0], [0], [1], [1], [0, 1, 1, 1], [], []>} : vector<8x3xf32>, vector<8x21xf32>, vector<3x21xf32> -> vector<3x21xf32>
    "tpu.trace_stop"() : () -> ()
    %86 = vector.extract_strided_slice %85 {offsets = [0, 0], sizes = [3, 16], strides = [1, 1]} : vector<3x21xf32> to vector<3x16xf32>
    %87 = vector.extract_strided_slice %85 {offsets = [0, 16], sizes = [3, 4], strides = [1, 1]} : vector<3x21xf32> to vector<3x4xf32>
    %88 = vector.extract_strided_slice %85 {offsets = [0, 20], sizes = [3, 1], strides = [1, 1]} : vector<3x21xf32> to vector<3x1xf32>
    %cst_33 = arith.constant 9.99999993E-9 : f32
    %89 = vector.broadcast %cst_33 : f32 to vector<3x1xf32>
    %90 = arith.maximumf %88, %89 : vector<3x1xf32>
    %cst_34 = arith.constant 1.000000e+00 : f32
    %91 = vector.broadcast %cst_34 : f32 to vector<3x1xf32>
    %92 = arith.divf %91, %90 : vector<3x1xf32>
    %93 = vector.broadcast %92 : vector<3x1xf32> to vector<3x4xf32>
    %94 = arith.mulf %87, %93 : vector<3x4xf32>
    %cst_35 = arith.constant 1.250000e-01 : f32
    %95 = vector.broadcast %cst_35 : f32 to vector<3x1xf32>
    %96 = arith.mulf %88, %95 : vector<3x1xf32>
    %97 = vector.extract_strided_slice %94 {offsets = [0, 0], sizes = [3, 1], strides = [1, 1]} : vector<3x4xf32> to vector<3x1xf32>
    %98 = vector.broadcast %97 : vector<3x1xf32> to vector<3x4xf32>
    %99 = arith.mulf %98, %94 : vector<3x4xf32>
    %100 = vector.extract_strided_slice %94 {offsets = [0, 1], sizes = [3, 1], strides = [1, 1]} : vector<3x4xf32> to vector<3x1xf32>
    %101 = vector.broadcast %100 : vector<3x1xf32> to vector<3x4xf32>
    %102 = arith.mulf %101, %94 : vector<3x4xf32>
    %103 = vector.extract_strided_slice %94 {offsets = [0, 2], sizes = [3, 1], strides = [1, 1]} : vector<3x4xf32> to vector<3x1xf32>
    %104 = vector.broadcast %103 : vector<3x1xf32> to vector<3x4xf32>
    %105 = arith.mulf %104, %94 : vector<3x4xf32>
    %106 = vector.extract_strided_slice %94 {offsets = [0, 3], sizes = [3, 1], strides = [1, 1]} : vector<3x4xf32> to vector<3x1xf32>
    %107 = vector.broadcast %106 : vector<3x1xf32> to vector<3x4xf32>
    %108 = arith.mulf %107, %94 : vector<3x4xf32>
    %109 = tpu.concatenate %99, %102, %105, %108 in 1 : vector<3x4xf32>, vector<3x4xf32>, vector<3x4xf32>, vector<3x4xf32> -> vector<3x16xf32>
    %110 = vector.broadcast %92 : vector<3x1xf32> to vector<3x16xf32>
    %111 = arith.mulf %86, %110 : vector<3x16xf32>
    %112 = arith.subf %111, %109 : vector<3x16xf32>
    %113 = tpu.iota {dimensions = array<i32: 1>} : vector<1x16xi32>
    %c5_i32 = arith.constant 5 : i32
    %c0_i32 = arith.constant 0 : i32
    %114 = arith.cmpi eq, %c5_i32, %c0_i32 : i32
    %c1_i32 = arith.constant 1 : i32
    %115 = arith.select %114, %c1_i32, %c5_i32 : i32
    %116 = vector.broadcast %115 : i32 to vector<1x16xi32>
    %117 = arith.remsi %113, %116 : vector<1x16xi32>
    %c0_i32_36 = arith.constant 0 : i32
    %118 = vector.broadcast %c0_i32_36 : i32 to vector<1x16xi32>
    %119 = arith.cmpi ne, %117, %118 : vector<1x16xi32>
    %c0_i32_37 = arith.constant 0 : i32
    %120 = vector.broadcast %c0_i32_37 : i32 to vector<1x16xi32>
    %121 = arith.cmpi slt, %117, %120 : vector<1x16xi32>
    %c0_i32_38 = arith.constant 0 : i32
    %122 = arith.cmpi slt, %115, %c0_i32_38 : i32
    %123 = vector.broadcast %122 : i1 to vector<1x16xi1>
    %124 = vector.broadcast %123 : vector<1x16xi1> to vector<1x16xi1>
    %125 = arith.xori %121, %124 : vector<1x16xi1>
    %126 = arith.andi %125, %119 : vector<1x16xi1>
    %127 = vector.broadcast %115 : i32 to vector<1x16xi32>
    %128 = arith.addi %117, %127 : vector<1x16xi32>
    %129 = arith.select %126, %128, %117 : vector<1x16xi1>, vector<1x16xi32>
    %c0_i32_39 = arith.constant 0 : i32
    %130 = vector.broadcast %c0_i32_39 : i32 to vector<1x16xi32>
    %131 = arith.cmpi eq, %129, %130 : vector<1x16xi32>
    %132 = arith.extui %131 : vector<1x16xi1> to vector<1x16xi32>
    %133 = arith.sitofp %132 : vector<1x16xi32> to vector<1x16xf32>
    %cst_40 = arith.constant 1.000000e-03 : f32
    %134 = vector.broadcast %cst_40 : f32 to vector<1x16xf32>
    %135 = arith.mulf %134, %133 : vector<1x16xf32>
    %136 = vector.broadcast %135 : vector<1x16xf32> to vector<3x16xf32>
    %137 = arith.addf %112, %136 : vector<3x16xf32>
    %138 = vector.extract_strided_slice %137 {offsets = [0, 0], sizes = [3, 1], strides = [1, 1]} : vector<3x16xf32> to vector<3x1xf32>
    %139 = vector.extract_strided_slice %137 {offsets = [0, 1], sizes = [3, 1], strides = [1, 1]} : vector<3x16xf32> to vector<3x1xf32>
    %140 = vector.extract_strided_slice %137 {offsets = [0, 2], sizes = [3, 1], strides = [1, 1]} : vector<3x16xf32> to vector<3x1xf32>
    %141 = vector.extract_strided_slice %137 {offsets = [0, 3], sizes = [3, 1], strides = [1, 1]} : vector<3x16xf32> to vector<3x1xf32>
    %142 = vector.extract_strided_slice %137 {offsets = [0, 4], sizes = [3, 1], strides = [1, 1]} : vector<3x16xf32> to vector<3x1xf32>
    %143 = vector.extract_strided_slice %137 {offsets = [0, 5], sizes = [3, 1], strides = [1, 1]} : vector<3x16xf32> to vector<3x1xf32>
    %144 = vector.extract_strided_slice %137 {offsets = [0, 6], sizes = [3, 1], strides = [1, 1]} : vector<3x16xf32> to vector<3x1xf32>
    %145 = vector.extract_strided_slice %137 {offsets = [0, 7], sizes = [3, 1], strides = [1, 1]} : vector<3x16xf32> to vector<3x1xf32>
    %146 = vector.extract_strided_slice %137 {offsets = [0, 8], sizes = [3, 1], strides = [1, 1]} : vector<3x16xf32> to vector<3x1xf32>
    %147 = vector.extract_strided_slice %137 {offsets = [0, 9], sizes = [3, 1], strides = [1, 1]} : vector<3x16xf32> to vector<3x1xf32>
    %148 = vector.extract_strided_slice %137 {offsets = [0, 10], sizes = [3, 1], strides = [1, 1]} : vector<3x16xf32> to vector<3x1xf32>
    %149 = vector.extract_strided_slice %137 {offsets = [0, 11], sizes = [3, 1], strides = [1, 1]} : vector<3x16xf32> to vector<3x1xf32>
    %150 = vector.extract_strided_slice %137 {offsets = [0, 12], sizes = [3, 1], strides = [1, 1]} : vector<3x16xf32> to vector<3x1xf32>
    %151 = vector.extract_strided_slice %137 {offsets = [0, 13], sizes = [3, 1], strides = [1, 1]} : vector<3x16xf32> to vector<3x1xf32>
    %152 = vector.extract_strided_slice %137 {offsets = [0, 14], sizes = [3, 1], strides = [1, 1]} : vector<3x16xf32> to vector<3x1xf32>
    %153 = vector.extract_strided_slice %137 {offsets = [0, 15], sizes = [3, 1], strides = [1, 1]} : vector<3x16xf32> to vector<3x1xf32>
    %154 = arith.mulf %138, %143 : vector<3x1xf32>
    %155 = arith.mulf %142, %139 : vector<3x1xf32>
    %156 = arith.subf %154, %155 : vector<3x1xf32>
    %157 = arith.mulf %138, %144 : vector<3x1xf32>
    %158 = arith.mulf %142, %140 : vector<3x1xf32>
    %159 = arith.subf %157, %158 : vector<3x1xf32>
    %160 = arith.mulf %138, %145 : vector<3x1xf32>
    %161 = arith.mulf %142, %141 : vector<3x1xf32>
    %162 = arith.subf %160, %161 : vector<3x1xf32>
    %163 = arith.mulf %139, %144 : vector<3x1xf32>
    %164 = arith.mulf %143, %140 : vector<3x1xf32>
    %165 = arith.subf %163, %164 : vector<3x1xf32>
    %166 = arith.mulf %139, %145 : vector<3x1xf32>
    %167 = arith.mulf %143, %141 : vector<3x1xf32>
    %168 = arith.subf %166, %167 : vector<3x1xf32>
    %169 = arith.mulf %140, %145 : vector<3x1xf32>
    %170 = arith.mulf %144, %141 : vector<3x1xf32>
    %171 = arith.subf %169, %170 : vector<3x1xf32>
    %172 = arith.mulf %148, %153 : vector<3x1xf32>
    %173 = arith.mulf %152, %149 : vector<3x1xf32>
    %174 = arith.subf %172, %173 : vector<3x1xf32>
    %175 = arith.mulf %147, %153 : vector<3x1xf32>
    %176 = arith.mulf %151, %149 : vector<3x1xf32>
    %177 = arith.subf %175, %176 : vector<3x1xf32>
    %178 = arith.mulf %147, %152 : vector<3x1xf32>
    %179 = arith.mulf %151, %148 : vector<3x1xf32>
    %180 = arith.subf %178, %179 : vector<3x1xf32>
    %181 = arith.mulf %146, %153 : vector<3x1xf32>
    %182 = arith.mulf %150, %149 : vector<3x1xf32>
    %183 = arith.subf %181, %182 : vector<3x1xf32>
    %184 = arith.mulf %146, %152 : vector<3x1xf32>
    %185 = arith.mulf %150, %148 : vector<3x1xf32>
    %186 = arith.subf %184, %185 : vector<3x1xf32>
    %187 = arith.mulf %146, %151 : vector<3x1xf32>
    %188 = arith.mulf %150, %147 : vector<3x1xf32>
    %189 = arith.subf %187, %188 : vector<3x1xf32>
    %190 = arith.mulf %156, %174 : vector<3x1xf32>
    %191 = arith.mulf %159, %177 : vector<3x1xf32>
    %192 = arith.subf %190, %191 : vector<3x1xf32>
    %193 = arith.mulf %162, %180 : vector<3x1xf32>
    %194 = arith.addf %192, %193 : vector<3x1xf32>
    %195 = arith.mulf %165, %183 : vector<3x1xf32>
    %196 = arith.addf %194, %195 : vector<3x1xf32>
    %197 = arith.mulf %168, %186 : vector<3x1xf32>
    %198 = arith.subf %196, %197 : vector<3x1xf32>
    %199 = arith.mulf %171, %189 : vector<3x1xf32>
    %200 = arith.addf %198, %199 : vector<3x1xf32>
    %cst_41 = arith.constant 9.99999982E-15 : f32
    %201 = vector.broadcast %cst_41 : f32 to vector<3x1xf32>
    %202 = arith.maximumf %200, %201 : vector<3x1xf32>
    %203 = math.log %202 : vector<3x1xf32>
    %cst_42 = arith.constant 1.000000e+00 : f32
    %204 = vector.broadcast %cst_42 : f32 to vector<3x1xf32>
    %205 = arith.divf %204, %202 : vector<3x1xf32>
    %206 = arith.mulf %143, %174 : vector<3x1xf32>
    %207 = arith.mulf %144, %177 : vector<3x1xf32>
    %208 = arith.subf %206, %207 : vector<3x1xf32>
    %209 = arith.mulf %145, %180 : vector<3x1xf32>
    %210 = arith.addf %208, %209 : vector<3x1xf32>
    %211 = arith.mulf %210, %205 : vector<3x1xf32>
    %cst_43 = arith.constant 0.000000e+00 : f32
    %212 = vector.broadcast %cst_43 : f32 to vector<3x1xf32>
    %213 = arith.subf %212, %139 : vector<3x1xf32>
    %214 = arith.mulf %213, %174 : vector<3x1xf32>
    %215 = arith.mulf %140, %177 : vector<3x1xf32>
    %216 = arith.addf %214, %215 : vector<3x1xf32>
    %217 = arith.mulf %141, %180 : vector<3x1xf32>
    %218 = arith.subf %216, %217 : vector<3x1xf32>
    %219 = arith.mulf %218, %205 : vector<3x1xf32>
    %220 = arith.mulf %151, %171 : vector<3x1xf32>
    %221 = arith.mulf %152, %168 : vector<3x1xf32>
    %222 = arith.subf %220, %221 : vector<3x1xf32>
    %223 = arith.mulf %153, %165 : vector<3x1xf32>
    %224 = arith.addf %222, %223 : vector<3x1xf32>
    %225 = arith.mulf %224, %205 : vector<3x1xf32>
    %cst_44 = arith.constant 0.000000e+00 : f32
    %226 = vector.broadcast %cst_44 : f32 to vector<3x1xf32>
    %227 = arith.subf %226, %147 : vector<3x1xf32>
    %228 = arith.mulf %227, %171 : vector<3x1xf32>
    %229 = arith.mulf %148, %168 : vector<3x1xf32>
    %230 = arith.addf %228, %229 : vector<3x1xf32>
    %231 = arith.mulf %149, %165 : vector<3x1xf32>
    %232 = arith.subf %230, %231 : vector<3x1xf32>
    %233 = arith.mulf %232, %205 : vector<3x1xf32>
    %cst_45 = arith.constant 0.000000e+00 : f32
    %234 = vector.broadcast %cst_45 : f32 to vector<3x1xf32>
    %235 = arith.subf %234, %142 : vector<3x1xf32>
    %236 = arith.mulf %235, %174 : vector<3x1xf32>
    %237 = arith.mulf %144, %183 : vector<3x1xf32>
    %238 = arith.addf %236, %237 : vector<3x1xf32>
    %239 = arith.mulf %145, %186 : vector<3x1xf32>
    %240 = arith.subf %238, %239 : vector<3x1xf32>
    %241 = arith.mulf %240, %205 : vector<3x1xf32>
    %242 = arith.mulf %138, %174 : vector<3x1xf32>
    %243 = arith.mulf %140, %183 : vector<3x1xf32>
    %244 = arith.subf %242, %243 : vector<3x1xf32>
    %245 = arith.mulf %141, %186 : vector<3x1xf32>
    %246 = arith.addf %244, %245 : vector<3x1xf32>
    %247 = arith.mulf %246, %205 : vector<3x1xf32>
    %cst_46 = arith.constant 0.000000e+00 : f32
    %248 = vector.broadcast %cst_46 : f32 to vector<3x1xf32>
    %249 = arith.subf %248, %150 : vector<3x1xf32>
    %250 = arith.mulf %249, %171 : vector<3x1xf32>
    %251 = arith.mulf %152, %162 : vector<3x1xf32>
    %252 = arith.addf %250, %251 : vector<3x1xf32>
    %253 = arith.mulf %153, %159 : vector<3x1xf32>
    %254 = arith.subf %252, %253 : vector<3x1xf32>
    %255 = arith.mulf %254, %205 : vector<3x1xf32>
    %256 = arith.mulf %146, %171 : vector<3x1xf32>
    %257 = arith.mulf %148, %162 : vector<3x1xf32>
    %258 = arith.subf %256, %257 : vector<3x1xf32>
    %259 = arith.mulf %149, %159 : vector<3x1xf32>
    %260 = arith.addf %258, %259 : vector<3x1xf32>
    %261 = arith.mulf %260, %205 : vector<3x1xf32>
    %262 = arith.mulf %142, %177 : vector<3x1xf32>
    %263 = arith.mulf %143, %183 : vector<3x1xf32>
    %264 = arith.subf %262, %263 : vector<3x1xf32>
    %265 = arith.mulf %145, %189 : vector<3x1xf32>
    %266 = arith.addf %264, %265 : vector<3x1xf32>
    %267 = arith.mulf %266, %205 : vector<3x1xf32>
    %cst_47 = arith.constant 0.000000e+00 : f32
    %268 = vector.broadcast %cst_47 : f32 to vector<3x1xf32>
    %269 = arith.subf %268, %138 : vector<3x1xf32>
    %270 = arith.mulf %269, %177 : vector<3x1xf32>
    %271 = arith.mulf %139, %183 : vector<3x1xf32>
    %272 = arith.addf %270, %271 : vector<3x1xf32>
    %273 = arith.mulf %141, %189 : vector<3x1xf32>
    %274 = arith.subf %272, %273 : vector<3x1xf32>
    %275 = arith.mulf %274, %205 : vector<3x1xf32>
    %276 = arith.mulf %150, %168 : vector<3x1xf32>
    %277 = arith.mulf %151, %162 : vector<3x1xf32>
    %278 = arith.subf %276, %277 : vector<3x1xf32>
    %279 = arith.mulf %153, %156 : vector<3x1xf32>
    %280 = arith.addf %278, %279 : vector<3x1xf32>
    %281 = arith.mulf %280, %205 : vector<3x1xf32>
    %cst_48 = arith.constant 0.000000e+00 : f32
    %282 = vector.broadcast %cst_48 : f32 to vector<3x1xf32>
    %283 = arith.subf %282, %146 : vector<3x1xf32>
    %284 = arith.mulf %283, %168 : vector<3x1xf32>
    %285 = arith.mulf %147, %162 : vector<3x1xf32>
    %286 = arith.addf %284, %285 : vector<3x1xf32>
    %287 = arith.mulf %149, %156 : vector<3x1xf32>
    %288 = arith.subf %286, %287 : vector<3x1xf32>
    %289 = arith.mulf %288, %205 : vector<3x1xf32>
    %cst_49 = arith.constant 0.000000e+00 : f32
    %290 = vector.broadcast %cst_49 : f32 to vector<3x1xf32>
    %291 = arith.subf %290, %142 : vector<3x1xf32>
    %292 = arith.mulf %291, %180 : vector<3x1xf32>
    %293 = arith.mulf %143, %186 : vector<3x1xf32>
    %294 = arith.addf %292, %293 : vector<3x1xf32>
    %295 = arith.mulf %144, %189 : vector<3x1xf32>
    %296 = arith.subf %294, %295 : vector<3x1xf32>
    %297 = arith.mulf %296, %205 : vector<3x1xf32>
    %298 = arith.mulf %138, %180 : vector<3x1xf32>
    %299 = arith.mulf %139, %186 : vector<3x1xf32>
    %300 = arith.subf %298, %299 : vector<3x1xf32>
    %301 = arith.mulf %140, %189 : vector<3x1xf32>
    %302 = arith.addf %300, %301 : vector<3x1xf32>
    %303 = arith.mulf %302, %205 : vector<3x1xf32>
    %cst_50 = arith.constant 0.000000e+00 : f32
    %304 = vector.broadcast %cst_50 : f32 to vector<3x1xf32>
    %305 = arith.subf %304, %150 : vector<3x1xf32>
    %306 = arith.mulf %305, %165 : vector<3x1xf32>
    %307 = arith.mulf %151, %159 : vector<3x1xf32>
    %308 = arith.addf %306, %307 : vector<3x1xf32>
    %309 = arith.mulf %152, %156 : vector<3x1xf32>
    %310 = arith.subf %308, %309 : vector<3x1xf32>
    %311 = arith.mulf %310, %205 : vector<3x1xf32>
    %312 = arith.mulf %146, %165 : vector<3x1xf32>
    %313 = arith.mulf %147, %159 : vector<3x1xf32>
    %314 = arith.subf %312, %313 : vector<3x1xf32>
    %315 = arith.mulf %148, %156 : vector<3x1xf32>
    %316 = arith.addf %314, %315 : vector<3x1xf32>
    %317 = arith.mulf %316, %205 : vector<3x1xf32>
    %318 = tpu.concatenate %211, %219, %225, %233, %241, %247, %255, %261, %267, %275, %281, %289, %297, %303, %311, %317 in 1 : vector<3x1xf32>, vector<3x1xf32>, vector<3x1xf32>, vector<3x1xf32>, vector<3x1xf32>, vector<3x1xf32>, vector<3x1xf32>, vector<3x1xf32>, vector<3x1xf32>, vector<3x1xf32>, vector<3x1xf32>, vector<3x1xf32>, vector<3x1xf32>, vector<3x1xf32>, vector<3x1xf32>, vector<3x1xf32> -> vector<3x16xf32>
    %319 = vector.extract_strided_slice %94 {offsets = [0, 0], sizes = [3, 1], strides = [1, 1]} : vector<3x4xf32> to vector<3x1xf32>
    %320 = vector.extract_strided_slice %94 {offsets = [0, 1], sizes = [3, 1], strides = [1, 1]} : vector<3x4xf32> to vector<3x1xf32>
    %321 = vector.extract_strided_slice %94 {offsets = [0, 2], sizes = [3, 1], strides = [1, 1]} : vector<3x4xf32> to vector<3x1xf32>
    %322 = vector.extract_strided_slice %94 {offsets = [0, 3], sizes = [3, 1], strides = [1, 1]} : vector<3x4xf32> to vector<3x1xf32>
    %323 = arith.mulf %211, %319 : vector<3x1xf32>
    %cst_51 = arith.constant 0.000000e+00 : f32
    %324 = vector.broadcast %cst_51 : f32 to vector<3x1xf32>
    %325 = arith.addf %324, %323 : vector<3x1xf32>
    %326 = arith.mulf %219, %320 : vector<3x1xf32>
    %327 = arith.addf %325, %326 : vector<3x1xf32>
    %328 = arith.mulf %225, %321 : vector<3x1xf32>
    %329 = arith.addf %327, %328 : vector<3x1xf32>
    %330 = arith.mulf %233, %322 : vector<3x1xf32>
    %331 = arith.addf %329, %330 : vector<3x1xf32>
    %332 = arith.mulf %241, %319 : vector<3x1xf32>
    %cst_52 = arith.constant 0.000000e+00 : f32
    %333 = vector.broadcast %cst_52 : f32 to vector<3x1xf32>
    %334 = arith.addf %333, %332 : vector<3x1xf32>
    %335 = arith.mulf %247, %320 : vector<3x1xf32>
    %336 = arith.addf %334, %335 : vector<3x1xf32>
    %337 = arith.mulf %255, %321 : vector<3x1xf32>
    %338 = arith.addf %336, %337 : vector<3x1xf32>
    %339 = arith.mulf %261, %322 : vector<3x1xf32>
    %340 = arith.addf %338, %339 : vector<3x1xf32>
    %341 = arith.mulf %267, %319 : vector<3x1xf32>
    %cst_53 = arith.constant 0.000000e+00 : f32
    %342 = vector.broadcast %cst_53 : f32 to vector<3x1xf32>
    %343 = arith.addf %342, %341 : vector<3x1xf32>
    %344 = arith.mulf %275, %320 : vector<3x1xf32>
    %345 = arith.addf %343, %344 : vector<3x1xf32>
    %346 = arith.mulf %281, %321 : vector<3x1xf32>
    %347 = arith.addf %345, %346 : vector<3x1xf32>
    %348 = arith.mulf %289, %322 : vector<3x1xf32>
    %349 = arith.addf %347, %348 : vector<3x1xf32>
    %350 = arith.mulf %297, %319 : vector<3x1xf32>
    %cst_54 = arith.constant 0.000000e+00 : f32
    %351 = vector.broadcast %cst_54 : f32 to vector<3x1xf32>
    %352 = arith.addf %351, %350 : vector<3x1xf32>
    %353 = arith.mulf %303, %320 : vector<3x1xf32>
    %354 = arith.addf %352, %353 : vector<3x1xf32>
    %355 = arith.mulf %311, %321 : vector<3x1xf32>
    %356 = arith.addf %354, %355 : vector<3x1xf32>
    %357 = arith.mulf %317, %322 : vector<3x1xf32>
    %358 = arith.addf %356, %357 : vector<3x1xf32>
    %359 = tpu.concatenate %331, %340, %349, %358 in 1 : vector<3x1xf32>, vector<3x1xf32>, vector<3x1xf32>, vector<3x1xf32> -> vector<3x4xf32>
    %360 = arith.mulf %331, %319 : vector<3x1xf32>
    %cst_55 = arith.constant 0.000000e+00 : f32
    %361 = vector.broadcast %cst_55 : f32 to vector<3x1xf32>
    %362 = arith.addf %361, %360 : vector<3x1xf32>
    %363 = arith.mulf %340, %320 : vector<3x1xf32>
    %364 = arith.addf %362, %363 : vector<3x1xf32>
    %365 = arith.mulf %349, %321 : vector<3x1xf32>
    %366 = arith.addf %364, %365 : vector<3x1xf32>
    %367 = arith.mulf %358, %322 : vector<3x1xf32>
    %368 = arith.addf %366, %367 : vector<3x1xf32>
    %cst_56 = arith.constant 9.99999996E-13 : f32
    %369 = vector.broadcast %cst_56 : f32 to vector<3x1xf32>
    %370 = arith.maximumf %96, %369 : vector<3x1xf32>
    %371 = math.log %370 : vector<3x1xf32>
    %cst_57 = arith.constant 7.35150814 : f32
    %372 = vector.broadcast %cst_57 : f32 to vector<3x1xf32>
    %373 = arith.addf %372, %203 : vector<3x1xf32>
    %cst_58 = arith.constant 5.000000e-01 : f32
    %374 = vector.broadcast %cst_58 : f32 to vector<3x1xf32>
    %375 = arith.mulf %374, %373 : vector<3x1xf32>
    %376 = arith.subf %371, %375 : vector<3x1xf32>
    %cst_59 = arith.constant -5.000000e-01 : f32
    %377 = vector.broadcast %cst_59 : f32 to vector<3x16xf32>
    %378 = arith.mulf %377, %318 : vector<3x16xf32>
    %cst_60 = arith.constant 5.000000e-01 : f32
    %379 = vector.broadcast %cst_60 : f32 to vector<3x1xf32>
    %380 = arith.mulf %379, %368 : vector<3x1xf32>
    %381 = arith.subf %376, %380 : vector<3x1xf32>
    %382 = tpu.concatenate %378, %359, %381 in 1 : vector<3x16xf32>, vector<3x4xf32>, vector<3x1xf32> -> vector<3x21xf32>
    "tpu.trace_start"() <{level = 10 : i32, message = "bf,kf->bk"}> : () -> ()
    %cst_61 = arith.constant dense<0.000000e+00> : vector<8x3xf32>
    %383 = tpu.matmul %84, %382, %cst_61 {dimension_numbers = #tpu.dot_dimension_numbers<[1], [1], [0], [0], [0, 0, 1, 0], [], []>} : vector<8x21xf32>, vector<3x21xf32>, vector<8x3xf32> -> vector<8x3xf32>
    "tpu.trace_stop"() : () -> ()
    %cst_62 = arith.constant dense<0xFF800000> : vector<8xf32>
    %384 = vector.multi_reduction <maximumf>, %383, %cst_62 [1] : vector<8x3xf32> to vector<8xf32>
    %385 = vector.shape_cast %384 : vector<8xf32> to vector<8x1xf32>
    %386 = vector.broadcast %385 : vector<8x1xf32> to vector<8x3xf32>
    %387 = arith.subf %383, %386 : vector<8x3xf32>
    %388 = math.exp %387 : vector<8x3xf32>
    %cst_63 = arith.constant dense<0.000000e+00> : vector<8xf32>
    %389 = vector.multi_reduction <add>, %388, %cst_63 [1] : vector<8x3xf32> to vector<8xf32>
    %390 = vector.shape_cast %389 : vector<8xf32> to vector<8x1xf32>
    %391 = math.log %390 : vector<8x1xf32>
    %392 = arith.addf %385, %391 : vector<8x1xf32>
    %cst_64 = arith.constant 0.000000e+00 : f32
    %393 = vector.broadcast %cst_64 : f32 to vector<8x1xf32>
    %394 = arith.subf %393, %392 : vector<8x1xf32>
    %cst_65 = arith.constant 0.000000e+00 : f32
    %395 = vector.broadcast %cst_65 : f32 to vector<8x119xf32>
    %396 = tpu.concatenate %394, %69, %52, %53, %395 in 1 : vector<8x1xf32>, vector<8x3xf32>, vector<8x1xf32>, vector<8x4xf32>, vector<8x119xf32> -> vector<8x128xf32>
    %cst_66 = arith.constant 0.000000e+00 : f32
    %397 = vector.broadcast %cst_66 : f32 to vector<3x107xf32>
    %398 = tpu.concatenate %96, %94, %112, %397 in 1 : vector<3x1xf32>, vector<3x4xf32>, vector<3x16xf32>, vector<3x107xf32> -> vector<3x128xf32>
    %cst_67 = arith.constant 0.000000e+00 : f32
    %399 = vector.broadcast %cst_67 : f32 to vector<5x128xf32>
    %400 = tpu.concatenate %398, %399 in 0 : vector<3x128xf32>, vector<5x128xf32> -> vector<8x128xf32>
    %c0_68 = arith.constant 0 : index
    %c0_69 = arith.constant 0 : index
    %401 = vector.load %arg4[%c0_68, %c0_69] : memref<16x128xf32, #tpu.memory_space<vmem>>, vector<8x128xf32>
    tpu.vector_store %arg4[%c0_68, %c0_69], %396 {strides = array<i32>} : memref<16x128xf32, #tpu.memory_space<vmem>>, vector<8x128xf32>,
    %c8 = arith.constant 8 : index
    %c0_70 = arith.constant 0 : index
    %402 = vector.load %arg4[%c8, %c0_70] : memref<16x128xf32, #tpu.memory_space<vmem>>, vector<8x128xf32>
    tpu.vector_store %arg4[%c8, %c0_70], %400 {strides = array<i32>} : memref<16x128xf32, #tpu.memory_space<vmem>>, vector<8x128xf32>,
    return
  }
}

</mosaic_0001>

<bundles_post_ra>
// kernel: dagmm_forward.1
= control target key start
LH: loop header
LB: loop body
LE: loop exit
PB: predicated region body
PF: predicated region fallthrough
CT: control target
= control target key end

     0   :  { %9 = vsyncpa [#allocation3], 0  ;;  %s2418_s0 = inlined_call_operand.vmem [shape: f32[8,4], index: 0, kind: input, shape index: {}]   ;;  %s2419_s1 = inlined_call_operand.vmem [shape: f32[8,12], index: 1, kind: input, shape index: {}]   ;;  %s2420_s2 = inlined_call_operand.hbm [shape: f32[8,16], index: 2, kind: input, shape index: {}]   ;;  %s2421_s3 = inlined_call_operand.hbm [shape: f32[32,128], index: 3, kind: input, shape index: {}]   ;;  %s2422_s4 = inlined_call_operand.vmem [shape: f32[16,128], index: 4, kind: output, shape index: {}]  }
   0x1   :  { %10 = vsyncpa [#allocation5], 0  ;;  %s1819_s15 = smov [#allocation2]   ;;  %s1820_s17 = smov [#allocation4]  }
   0x2   :  { %s21_s16 = sshll.u32 %s1819_s15, 4  ;;  %s30_s18 = sshll.u32 %s1820_s17, 4  ;;  %s22_s16 = int_to_ptr.vmem [resolvable:$true] %s21_s16  ;;  %s31_s18 = int_to_ptr.vmem [resolvable:$true] %s30_s18 }
   0x3   :  { %s1783_s19 = scalar_lea.vmem %s22_s16, 128  ;;  %p1788_p1 = scmp.lt.s32.totalorder %s22_s16, %s22_s16 }
   0x4   :  { %p1784_p0 = scmp.ne.s32.totalorder %s22_s16, %s1783_s19  ;;  %p1789_p2 = scmp.lt.s32.totalorder %s1783_s19, %s1783_s19 }
   0x6   :  { %p1790_p3 = por %p1789_p2, %p1788_p1 }
   0x8   :  { %p1791_p4 = pnand %p1790_p3, %p1784_p0 }
   0xa   :  { %1794 = shalt.err (!%p1791_p4)
}
   0xb   :  { %24 = dma.hbm_to_vmem [thread:$0]  %s2420_s2, 128, %s22_s16, [#allocation3]  }
   0xc   :  { %s1803_s22 = scalar_lea.vmem %s31_s18, 512  ;;  %p1808_p6 = scmp.lt.s32.totalorder %s31_s18, %s31_s18 }
   0xd   :  { %p1804_p5 = scmp.ne.s32.totalorder %s31_s18, %s1803_s22  ;;  %p1809_p7 = scmp.lt.s32.totalorder %s1803_s22, %s1803_s22 }
   0xf   :  { %p1810_p8 = por %p1809_p7, %p1808_p6 }
  0x11   :  { %p1811_p9 = pnand %p1810_p8, %p1804_p5 }
  0x13   :  { %1814 = shalt.err (!%p1811_p9)
}
  0x14   :  { %s1821_s23 = smov 128   ;;  %s1822_s24 = smov 8  }
  0x15   :  { %36 = dma.hbm_to_vmem [thread:$0]  %s2421_s3, 512, %s31_s18, [#allocation5], %s1821_s23, %s1821_s23, %s1822_s24  }
  0x16   :  { %1815 = dma.done.wait [#allocation3], 128  }
  0x17   :  { %1816 = vsyncadd [#allocation3], 4294967168 }
  0x18   :  { %1817 = dma.done.wait [#allocation5], 512  }
  0x19   :  { %1818 = vsyncadd [#allocation5], 4294966784  ;;  %v1823_v0 = vmov 0.0   ;;  %vm1824_vm0 = vmmov 0   ;;  %v44_v1 = vld [vmem:[%s2419_s1] sm:$0xff]  ;;  %v1912_v2 = vld [vmem:[#allocation4 + $0x8] sm:$0xff] }
  0x1a   :  { %1626 = vmatprep.subr.mxu0 %v1823_v0  ;;  %1630 = vmatprep.mubr.msk.f32.mxu0 %vm1824_vm0, %v1823_v0  ;;  %s1825_s3 = smov 4   ;;  %v1916_v3 = vld [vmem:[#allocation4] sm:$0xff]  ;;  %v57_v4 = vld [vmem:[#allocation4 + $0x10] sm:$0xff]  ;;  %v58_v5 = vld [vmem:[#allocation4 + $0x18] sm:$0xff]  ;;  %s1826_s28 = smov 80   ;;  %vm49_vm1 = vcmask 31744  }
  0x1b   :  { %1633 = vmatprep.subr.mxu1 %v1823_v0  ;;  %1641 = vmatprep.mubr.msk.f32.mxu1 %vm1824_vm0, %v1823_v0  ;;  %v43_v6 = vld [vmem:[%s2418_s0] sm:$0xff]  ;;  %vm70_vm2 = vcmask 130048   ;;  %v1584_v13 = vld [vmem:[#allocation4 + $0x12] ss:$0 sm:$0xff]  ;;  %vm165_vm3 = vcmask 261120   ;;  %vm247_vm4 = vcmask 1041408  }
  0x1c   :  { %46 = vrot.lane.b32.xlu0 %v44_v1, %s1825_s3  ;;  %1627 = vmatpush3.msra.mxu0 %v1912_v2  ;;  %v60_v18 = vld [vmem:[#allocation4 + $0x10] sm:$0x3]  ;;  %s1827_s0 = smov 96   ;;  %v1586_v19 = vld [vmem:[#allocation4 + $0x1b] ss:$0 sm:$0xff]  ;;  %vm243_vm5 = vcmask 15360  }
  0x1d   :  { %1628 = vmatprep.subr.mxu0 %v1823_v0  ;;  %157 = vrot.lane.b32.xlu1 %v57_v4, %s1826_s28  ;;  %v1588_v27 = vld [vmem:[#allocation4 + $0x13] ss:$0 sm:$0xff]  ;;  %v51_v32 = vld [vmem:[#allocation2] sm:$0xff]  ;;  %s1828_s30 = smov 78   ;;  %v63_v42 = vld [vmem:[#allocation4 + $0x14] sm:$0xf] }
  0x1e   :  { %1629 = vmatpush3.msra.mxu0 %v1916_v3  ;;  %v416_v33 = vmul.f32 %v51_v32, %v51_v32  ;;  %v1591_v35 = vld [vmem:[#allocation4 + $0x19] ss:$0 sm:$0xff]  ;;  %vm452_vm6 = vcmask 1043456   ;;  %v1829_v43 = vmov 1   ;;  %vm443_vm9 = vcmask 23552   ;;  %s1833_s5 = smov 16  }
  0x1f   :  { %1644 = vmatprep.subr.mxu0 %v1823_v0  ;;  %1736 = vset.pattern.permute.xlu0 %v1829_v43  ;;  %v1830_v57 = vmov 2   ;;  %v1831_v58 = vmov 3   ;;  %v1593_v60 = vld [vmem:[#allocation4 + $0x18] ss:$0 sm:$0xff]  ;;  %s1834_s6 = smov 12   ;;  %vm656_vm10 = vcmask 64512  }
  0x20   :  { %159 = vrot.lane.b32.xlu0 %v58_v5, %s1826_s28  ;;  %v417_v34 = vsel %vm70_vm2, %v416_v33, 0.0  ;;  %vm658_vm11 = vcmask 97280   ;;  %vm664_vm12 = vcmask 162816   ;;  %s1840_s7 = smov 112   ;;  %s1841_s8 = smov 116  }
  0x21   :  { %155 = vrot.lane.b32.xlu1 %v1912_v2, %s1826_s28  ;;  %s1842_s9 = smov 120   ;;  %s1843_s10 = smov 124  }
  0x22   :  { %s1844_s11 = smov 3   ;;  %s1845_s12 = smov 1  }
  0x23   :  { %s1846_s13 = smov 122   ;;  %s1847_s14 = smov 2  }
  0x24   :  { %153 = vrot.lane.b32.xlu0 %v1916_v3, %s1826_s28  ;;  %s1848_s15 = smov 123   ;;  %s1849_s16 = smov 121  }
  0x25   :  { %332 = vrot.lane.b32.xlu1 %v58_v5, %s1827_s0  ;;  %s1850_s17 = smov 119   ;;  %s1851_s18 = smov 118  }
  0x26   :  { %s1852_s19 = smov 10   ;;  %s1853_s20 = smov 14  }
  0x27   :  { %s1854_s21 = smov 13   ;;  %s1855_s22 = smov 15  }
  0x28   :  { %330 = vrot.lane.b32.xlu0 %v57_v4, %s1827_s0  ;;  %s1856_s23 = smov 127   ;;  %s1857_s25 = smov 126  }
  0x29   :  { %328 = vrot.lane.b32.xlu1 %v1912_v2, %s1827_s0  ;;  %s1858_s26 = smov 11   ;;  %s1859_s2 = smov 9  }
  0x2a   :  { %s1860_s27 = smov 125   ;;  %s1861_s28 = smov 6  }
  0x2b   :  { %s1862_s1 = smov 7   ;;  %s1863_s29 = smov 111  }
  0x2c   :  { %326 = vrot.lane.b32.xlu0 %v1916_v3, %s1827_s0  ;;  %s1864_s0 = smov 117  }
  0x4b   :  { %418 = vadd.xlane.f32.xlu0 %v417_v34  ;;  %v1835_v34 = vmov 20  }
  0x61   :  { %535 = vrot.lane.b32.xlu0 %v1912_v2, %s1828_s30  ;;  %v1832_v2 = vmov 0  }
  0x62   :  { %1739 = vset.pattern.permute.xlu1 %v1832_v2 }
  0x8e   :  { %v47_v7 = vpop.permute.xlu0 %46 }
  0x8f   :  { %v50_v8 = vsel %vm49_vm1, %v43_v6, %v47_v7  ;;  %v158_v10 = vpop.permute.xlu1 %157 }
  0x90   :  { %1631 = vmatmul.mubr.msk.f32.vlgmr.msra.gmra.mxu0 %vm70_vm2, %v50_v8 }
  0x91   :  { %1646 = vmatprep.mubr.msk.f32.mxu0 %vm1824_vm0, %v1823_v0  ;;  %1645 = vmatpush3.msk.msra.mxu0 %vm247_vm4, %v60_v18  ;;  %vm1270_vm4 = vcmask 39936  }
  0x92   :  { %v160_v9 = vpop.permute.xlu0 %159  ;;  %1649 = vmatprep.subr.mxu0 %v1823_v0 }
  0x93   :  { %1634 = vmatpush3.msra.mxu1 %v160_v9  ;;  %v156_v11 = vpop.permute.xlu1 %155 }
  0x94   :  { %1635 = vmatprep.subr.mxu1 %v1823_v0 }
  0x95   :  { %1636 = vmatpush3.msra.mxu1 %v158_v10 }
  0x96   :  { %1637 = vmatprep.subr.mxu1 %v1823_v0  ;;  %v154_v12 = vpop.permute.xlu0 %153 }
  0x97   :  { %1638 = vmatpush3.msra.mxu1 %v156_v11  ;;  %v333_v23 = vpop.permute.xlu1 %332 }
  0x98   :  { %1639 = vmatprep.subr.mxu1 %v1823_v0 }
  0x99   :  { %1640 = vmatpush3.msra.mxu1 %v154_v12 }
  0x9a   :  { %1660 = vmatprep.subr.mxu1 %v1823_v0  ;;  %v331_v24 = vpop.permute.xlu0 %330 }
  0x9b   :  { %v329_v25 = vpop.permute.xlu1 %328 }
  0x9e   :  { %v327_v26 = vpop.permute.xlu0 %326 }
  0xd4   :  { %v1958_v44 = vpop.xlane.xlu0 %418 }
  0xd5   :  { %v427_v45 = vmax.f32 %v1958_v44, 1e-16 }
  0xd8   :  { %v536_v56 = vpop.permute.xlu0 %535 }
 0x150   :  { %v140_v14 = vpop.f32.mrf.mxu0 }
 0x151   :  { %v141_v15 = vadd.f32 %v1584_v13, %v140_v14 }
 0x152   :  { %v1632_v16 = vpop.f32.mrf.mxu0 }
 0x153   :  { %1746 = vtanh.f32 %v141_v15 }
 0x160   :  { %v1747_v17 = vpop.eup %1746 }
 0x161   :  { %1642 = vmatmul.mubr.msk.f32.vlgmr.msra.gmra.mxu1 %vm165_vm3, %v1747_v17 }
 0x162   :  { %1662 = vmatprep.mubr.msk.f32.mxu1 %vm1824_vm0, %v1823_v0  ;;  %1661 = vmatpush3.msk.msra.mxu1 %vm452_vm6, %v63_v42  ;;  %vm1272_vm6 = vcmask 48128  }
 0x163   :  { %1665 = vmatprep.subr.mxu1 %v1823_v0 }
 0x221   :  { %v235_v20 = vpop.f32.mrf.mxu1 }
 0x222   :  { %v236_v21 = vadd.f32 %v1586_v19, %v235_v20 }
 0x223   :  { %v1643_v22 = vpop.f32.mrf.mxu1 }
 0x224   :  { %1647 = vmatmul.mubr.msk.f32.vlgmr.msra.gmra.mxu0 %vm243_vm5, %v236_v21 }
 0x225   :  { %1657 = vmatprep.mubr.msk.f32.mxu0 %vm1824_vm0, %v1823_v0  ;;  %1650 = vmatpush3.msra.mxu0 %v333_v23 }
 0x226   :  { %1651 = vmatprep.subr.mxu0 %v1823_v0 }
 0x227   :  { %1652 = vmatpush3.msra.mxu0 %v331_v24 }
 0x228   :  { %1653 = vmatprep.subr.mxu0 %v1823_v0 }
 0x229   :  { %1654 = vmatpush3.msra.mxu0 %v329_v25 }
 0x22a   :  { %1655 = vmatprep.subr.mxu0 %v1823_v0 }
 0x22b   :  { %1656 = vmatpush3.msra.mxu0 %v327_v26 }
 0x22c   :  { %1672 = vmatprep.subr.mxu0 %v1823_v0 }
 0x2e4   :  { %v317_v28 = vpop.f32.mrf.mxu0 }
 0x2e5   :  { %v318_v29 = vadd.f32 %v1588_v27, %v317_v28 }
 0x2e6   :  { %v1648_v30 = vpop.f32.mrf.mxu0 }
 0x2e7   :  { %1748 = vtanh.f32 %v318_v29 }
 0x2f4   :  { %v1749_v31 = vpop.eup %1748 }
 0x2f5   :  { %1658 = vmatmul.mubr.msk.f32.vlgmr.msra.gmra.mxu0 %vm165_vm3, %v1749_v31  ;;  %vm1265_vm3 = vcmask 7168  }
 0x2f6   :  { %1674 = vmatprep.mubr.msk.f32.mxu0 %vm1824_vm0, %v1823_v0 }
 0x3b5   :  { %v407_v36 = vpop.f32.mrf.mxu0 }
 0x3b6   :  { %v1951_v37 = vadd.f32 %v1591_v35, %v407_v36 }
 0x3b7   :  { %v1659_v38 = vpop.f32.mrf.mxu0 }
 0x3b8   :  { %v411_v39 = vsub.f32 %v51_v32, %v1951_v37 }
 0x3ba   :  { %v412_v40 = vmul.f32 %v411_v39, %v411_v39  ;;  %v1836_v39 = vmov 19  }
 0x3bc   :  { %v413_v41 = vsel %vm70_vm2, %v412_v40, 0.0 }
 0x3bd   :  { %414 = vadd.xlane.f32.xlu1 %v413_v41  ;;  %v1837_v41 = vmov 16  }
 0x3ce   :  { %533 = vrot.lane.b32.xlu1 %v1916_v3, %s1828_s30  ;;  %v1596_v3 = vld [vmem:[#allocation4 + $0x1a] ss:$0 sm:$0xff]  ;;  %s1865_s30 = smov 115  }
 0x446   :  { %v415_v46 = vpop.xlane.xlu1 %414 }
 0x447   :  { %1750 = vrsqrt.f32 %v415_v46  ;;  %vm422_vm7 = vcmp.eq.f32.partialorder %v415_v46, inf  ;;  %v425_v50 = vand.u32 2147483648, %v415_v46  ;;  %vm424_vm8 = vcmp.eq.f32.partialorder %v415_v46, 0.0 }
 0x448   :  { %1752 = vrsqrt.f32 %v427_v45  ;;  %v1838_v45 = vmov 17  }
 0x44a   :  { %v534_v59 = vpop.permute.xlu1 %533 }
 0x454   :  { %v1751_v47 = vpop.eup %1750 }
 0x455   :  { %v421_v48 = vmul.f32 %v1751_v47, %v415_v46  ;;  %v1753_v49 = vpop.eup %1752 }
 0x457   :  { %v423_v51 = vsel %vm422_vm7, %v415_v46, %v421_v48  ;;  %v1839_v46 = vmov 18   ;;  %vm1274_vm7 = vcmask 56320  }
 0x458   :  { %v426_v52 = vsel %vm424_vm8, %v425_v50, %v423_v51  ;;  %vm1279_vm8 = vcmask 80896  }
 0x459   :  { %v429_v53 = vmul.f32 %v1753_v49, %v426_v52 }
 0x45b   :  { %v442_v54 = vsel %vm243_vm5, %v236_v21, %v429_v53 }
 0x45c   :  { %v1963_v55 = vsel %vm443_vm9, %v442_v54, %v429_v53 }
 0x45d   :  { %629 = vperm.xlu0 %1736, %v1963_v55   ;;  %1663 = vmatmul.mubr.msk.f32.vlgmr.msra.gmra.mxu1 %vm49_vm1, %v1963_v55 }
 0x45e   :  { %1666 = vmatpush3.msra.mxu1 %v536_v56  ;;  %1669 = vmatprep.mubr.msk.f32.mxu1 %vm1824_vm0, %v1823_v0  ;;  %v822_v56 = vlaneseq }
 0x45f   :  { %1667 = vmatprep.subr.mxu1 %v1823_v0 }
 0x460   :  { %1668 = vmatpush3.msra.mxu1 %v534_v59 }
 0x461   :  { %1737 = vset.pattern.permute.xlu0 %v1830_v57  ;;  %1677 = vmatprep.subr.mxu1 %v1823_v0  ;;  %v823_v57 = vand.u32 127, %v822_v56 }
 0x462   :  { %634 = vperm.xlu0 %1737, %v1963_v55  }
 0x466   :  { %1738 = vset.pattern.permute.xlu0 %v1831_v58  ;;  %v2019_v58 = vmul.u32.u64.low 3435973837, %v823_v57  ;;  %v2020_v59 = vmul.u32.u64.high 3435973837, %v823_v57, %v2019_v58 }
 0x467   :  { %639 = vperm.xlu0 %1738, %v1963_v55  }
 0x46b   :  { %1740 = vset.pattern.permute.xlu0 %v1835_v34 }
 0x4d8   :  { %v630_v8 = vpop.permute.xlu0 %629 }
 0x4d9   :  { %v632_v9 = vmul.f32 %v630_v8, %v1963_v55 }
 0x4dd   :  { %v635_v10 = vpop.permute.xlu0 %634 }
 0x4de   :  { %v637_v11 = vmul.f32 %v635_v10, %v1963_v55 }
 0x4e2   :  { %v640_v17 = vpop.permute.xlu0 %639 }
 0x4e3   :  { %v642_v18 = vmul.f32 %v640_v17, %v1963_v55 }
 0x51d   :  { %v522_v61 = vpop.f32.mrf.mxu1 }
 0x51e   :  { %v523_v62 = vadd.f32 %v1593_v60, %v522_v61  ;;  %v830_v60 = vshrl.u32 %v2020_v59, 2 }
 0x51f   :  { %v1664_v63 = vpop.f32.mrf.mxu1 }
 0x520   :  { %1754 = vtanh.f32 %v523_v62  ;;  %v831_v61 = vmul.u32 5, %v830_v60 }
 0x522   :  { %v832_v62 = vsub.s32 %v823_v57, %v831_v61 }
 0x524   :  { %vm835_vm13 = vcmp.ne.s32.totalorder %v832_v62, 0  ;;  %vm836_vm14 = vcmp.lt.s32.totalorder %v832_v62, 0 }
 0x525   :  { %vm837_vm15 = vmand %vm836_vm14, %vm835_vm13  ;;  %vm1281_vm13 = vcmask 89088   ;;  %vm1284_vm14 = vcmask 105472  }
 0x52d   :  { %v1755_v1 = vpop.eup %1754 }
 0x52e   :  { %1670 = vmatmul.mubr.msk.f32.vlgmr.msra.gmra.mxu1 %vm70_vm2, %v1755_v1  ;;  %v838_v1 = vadd.s32 5, %v832_v62 }
 0x52f   :  { %1679 = vmatprep.mubr.msk.f32.mxu1 %vm1824_vm0, %v1823_v0 }
 0x530   :  { %v839_v2 = vsel %vm837_vm15, %v838_v1, %v832_v62  ;;  %vm1286_vm15 = vcmask 113664  }
 0x531   :  { %vm840_vm0 = vcmp.eq.s32.totalorder %v839_v2, 0 }
 0x5ee   :  { %v608_v4 = vpop.f32.mrf.mxu1 }
 0x5ef   :  { %v609_v5 = vadd.f32 %v1596_v3, %v608_v4 }
 0x5f0   :  { %v1671_v6 = vpop.f32.mrf.mxu1 }
 0x5f1   :  { %v612_v7 = vsel %vm443_vm9, %v609_v5, -inf }
 0x5f2   :  { %613 = vmax.xlane.f32.xlu1 %v612_v7 }
 0x603   :  { %624 = vperm.xlu1 %1739, %v1963_v55  }
 0x607   :  { %644 = vrot.lane.b32.xlu1 %v632_v9, %s1825_s3 }
 0x60b   :  { %648 = vrot.lane.b32.xlu1 %v637_v11, %s1822_s24 }
 0x60f   :  { %660 = vrot.lane.b32.xlu1 %v1963_v55, %s1833_s5 }
 0x67b   :  { %v614_v12 = vpop.xlane.xlu1 %613 }
 0x67c   :  { %v615_v13 = vsub.f32 %v609_v5, %v614_v12  ;;  %v1599_v5 = vsel %vm840_vm0, 1.0, %v1823_v0  ;;  %vm1288_vm0 = vcmask 121856  }
 0x67d   :  { %v843_v7 = vmul.f32 0.001, %v1599_v5 }
 0x67e   :  { %v616_v14 = vmul.f32 1.442695, %v615_v13 }
 0x67f   :  { %v625_v19 = vpop.permute.xlu1 %624 }
 0x680   :  { %1756 = vpow2.f32 %v616_v14  ;;  %v627_v23 = vmul.f32 %v625_v19, %v1963_v55 }
 0x683   :  { %v645_v20 = vpop.permute.xlu1 %644 }
 0x684   :  { %v655_v24 = vsel %vm49_vm1, %v627_v23, %v645_v20 }
 0x687   :  { %v649_v21 = vpop.permute.xlu1 %648 }
 0x688   :  { %v657_v25 = vsel %vm656_vm10, %v655_v24, %v649_v21 }
 0x68b   :  { %v661_v27 = vpop.permute.xlu1 %660 }
 0x68d   :  { %v1757_v15 = vpop.eup %1756 }
 0x68e   :  { %v618_v16 = vsel %vm443_vm9, %v1757_v15, 0.0 }
 0x68f   :  { %619 = vadd.xlane.f32.xlu0 %v618_v16 }
 0x6a5   :  { %652 = vrot.lane.b32.xlu0 %v642_v18, %s1834_s6 }
 0x718   :  { %v620_v22 = vpop.xlane.xlu0 %619 }
 0x719   :  { %1758 = vrcp.f32 %v620_v22 }
 0x71c   :  { %v653_v26 = vpop.permute.xlu0 %652 }
 0x71d   :  { %v659_v28 = vsel %vm658_vm11, %v657_v25, %v653_v26 }
 0x71e   :  { %v663_v29 = vsel %vm70_vm2, %v659_v28, %v661_v27 }
 0x71f   :  { %v1994_v30 = vsel %vm664_vm12, %v663_v29, 1.0 }
 0x720   :  { %1673 = vmatpush3.msra.mxu0 %v1994_v30 }
 0x726   :  { %v1759_v31 = vpop.eup %1758 }
 0x727   :  { %v1997_v32 = vmul.f32 %v1759_v31, %v1757_v15 }
 0x729   :  { %666 = vxpose.xlu1.b32.start.end [1/1] (short) (narrow) %v1997_v32, 8 }
 0x747   :  { %1744 = vset.pattern.permute.xlu1 %v1836_v39 }
 0x7a5   :  { %v682_v33 = vpop.trf.xlu1 }
 0x7a6   :  { %1675 = vmatmul.mubr.msk.f32.vlgmr.msra.gmra.mxu0 %vm656_vm10, %v682_v33 }
 0x866   :  { %v2001_v35 = vpop.f32.mrf.mxu0 }
 0x867   :  { %v771_v36 = vmax.f32 %v2001_v35, 1e-08 }
 0x868   :  { %v1676_v38 = vpop.f32.mrf.mxu0 }
 0x869   :  { %1760 = vrcp.f32 %v771_v36 }
 0x876   :  { %v1761_v40 = vpop.eup %1760 }
 0x877   :  { %776 = vperm.xlu0 %1740, %v1761_v40  }
 0x87b   :  { %1741 = vset.pattern.permute.xlu0 %v1837_v41 }
 0x8f2   :  { %v777_v42 = vpop.permute.xlu0 %776 }
 0x8f3   :  { %v2005_v43 = vmul.f32 %v777_v42, %v2001_v35 }
 0x8f5   :  { %798 = vperm.xlu1 %1744, %v2005_v43   ;;  %783 = vperm.xlu0 %1741, %v2005_v43  }
 0x8f9   :  { %1742 = vset.pattern.permute.xlu0 %v1838_v45 }
 0x8fa   :  { %788 = vperm.xlu0 %1742, %v2005_v43  }
 0x8fe   :  { %1743 = vset.pattern.permute.xlu0 %v1839_v46 }
 0x8ff   :  { %793 = vperm.xlu0 %1743, %v2005_v43  }
 0x903   :  { %1745 = vset.pattern.permute.xlu0 %v1836_v39 }
 0x970   :  { %v784_v47 = vpop.permute.xlu0 %783  ;;  %v799_v53 = vpop.permute.xlu1 %798 }
 0x971   :  { %v786_v48 = vmul.f32 %v784_v47, %v2005_v43  ;;  %v801_v54 = vmul.f32 %v799_v53, %v2005_v43 }
 0x973   :  { %803 = vrot.lane.b32.xlu0 %v786_v48, %s1840_s7 }
 0x975   :  { %v789_v49 = vpop.permute.xlu0 %788 }
 0x976   :  { %v791_v50 = vmul.f32 %v789_v49, %v2005_v43 }
 0x978   :  { %807 = vrot.lane.b32.xlu0 %v791_v50, %s1841_s8 }
 0x97a   :  { %v794_v51 = vpop.permute.xlu0 %793 }
 0x97b   :  { %v796_v52 = vmul.f32 %v794_v51, %v2005_v43 }
 0x97d   :  { %811 = vrot.lane.b32.xlu0 %v796_v52, %s1842_s9 }
 0x981   :  { %815 = vrot.lane.b32.xlu0 %v801_v54, %s1843_s10 }
 0x9e5   :  { %v804_v63 = vpop.permute.xlu0 %803 }
 0x9ea   :  { %v808_v3 = vpop.permute.xlu0 %807 }
 0x9eb   :  { %v818_v6 = vsel %vm49_vm1, %v804_v63, %v808_v3 }
 0x9ef   :  { %v812_v4 = vpop.permute.xlu0 %811 }
 0x9f0   :  { %v819_v8 = vsel %vm656_vm10, %v818_v6, %v812_v4 }
 0x9f3   :  { %v816_v9 = vpop.permute.xlu0 %815 }
 0x9f4   :  { %v820_v10 = vsel %vm658_vm11, %v819_v8, %v816_v9 }
 0x9f5   :  { %v2028_v11 = vsub.f32 %v2005_v43, %v820_v10 }
 0x9f7   :  { %v2031_v12 = vadd.f32 %v843_v7, %v2028_v11 }
 0x9f9   :  { %850 = vrot.lane.b32.xlu1 %v2031_v12, %s1844_s11  ;;  %876 = vrot.lane.b32.xlu0 %v2031_v12, %s1845_s12 }
 0x9fd   :  { %859 = vrot.lane.b32.xlu1 %v2031_v12, %s1846_s13  ;;  %863 = vrot.lane.b32.xlu0 %v2031_v12, %s1847_s14 }
 0xa01   :  { %846 = vrot.lane.b32.xlu1 %v2031_v12, %s1848_s15  ;;  %872 = vrot.lane.b32.xlu0 %v2031_v12, %s1849_s16 }
 0xa6b   :  { %v851_v0 = vpop.permute.xlu1 %850  ;;  %v877_v13 = vpop.permute.xlu0 %876 }
 0xa6c   :  { %v853_v14 = vmul.f32 %v851_v0, %v2031_v12  ;;  %v879_v15 = vmul.f32 %v877_v13, %v2031_v12 }
 0xa6e   :  { %855 = vrot.lane.b32.xlu1 %v853_v14, %s1843_s10  ;;  %881 = vrot.lane.b32.xlu0 %v879_v15, %s1843_s10 }
 0xa6f   :  { %v864_v16 = vpop.permute.xlu0 %863  ;;  %v860_v18 = vpop.permute.xlu1 %859 }
 0xa70   :  { %v866_v17 = vmul.f32 %v864_v16, %v2031_v12  ;;  %v862_v25 = vmul.f32 %v860_v18, %v2031_v12 }
 0xa72   :  { %868 = vrot.lane.b32.xlu0 %v866_v17, %s1843_s10 }
 0xa73   :  { %v873_v19 = vpop.permute.xlu0 %872  ;;  %v847_v20 = vpop.permute.xlu1 %846 }
 0xa74   :  { %v875_v21 = vmul.f32 %v873_v19, %v2031_v12  ;;  %v849_v26 = vmul.f32 %v847_v20, %v2031_v12 }
 0xae0   :  { %v882_v22 = vpop.permute.xlu0 %881  ;;  %v856_v24 = vpop.permute.xlu1 %855 }
 0xae1   :  { %v2051_v23 = vsub.f32 %v875_v21, %v882_v22  ;;  %v2056_v28 = vsub.f32 %v849_v26, %v856_v24 }
 0xae3   :  { %902 = vrot.lane.b32.xlu0 %v2051_v23, %s1849_s16 }
 0xae4   :  { %v869_v27 = vpop.permute.xlu0 %868 }
 0xae5   :  { %v2058_v29 = vsub.f32 %v862_v25, %v869_v27 }
 0xae7   :  { %920 = vrot.lane.b32.xlu0 %v2056_v28, %s1846_s13  ;;  %911 = vrot.lane.b32.xlu1 %v2058_v29, %s1849_s16 }
 0xaeb   :  { %891 = vrot.lane.b32.xlu0 %v2058_v29, %s1850_s17  ;;  %886 = vrot.lane.b32.xlu1 %v2056_v28, %s1851_s18 }
 0xaef   :  { %1064 = vrot.lane.b32.xlu0 %v2058_v29, %s1848_s15  ;;  %896 = vrot.lane.b32.xlu1 %v2056_v28, %s1850_s17 }
 0xaf3   :  { %934 = vrot.lane.b32.xlu0 %v2056_v28, %s1848_s15  ;;  %1055 = vrot.lane.b32.xlu1 %v2051_v23, %s1846_s13 }
 0xaf7   :  { %1101 = vrot.lane.b32.xlu0 %v2051_v23, %s1852_s19  ;;  %1075 = vrot.lane.b32.xlu1 %v2051_v23, %s1853_s20 }
 0xafb   :  { %983 = vrot.lane.b32.xlu0 %v2058_v29, %s1854_s21  ;;  %1084 = vrot.lane.b32.xlu1 %v2058_v29, %s1855_s22 }
 0xaff   :  { %1155 = vrot.lane.b32.xlu1 %v2051_v23, %s1854_s21 }
 0xb55   :  { %v903_v31 = vpop.permute.xlu0 %902 }
 0xb56   :  { %v905_v33 = vmul.f32 %v903_v31, %v2056_v28  ;;  %v1143_v54 = vmul.f32 %v903_v31, %v2031_v12 }
 0xb58   :  { %907 = vrot.lane.b32.xlu0 %v905_v33, %s1856_s23 }
 0xb59   :  { %v912_v34 = vpop.permute.xlu1 %911  ;;  %v2083_v36 = vpop.permute.xlu0 %920 }
 0xb5a   :  { %v914_v38 = vmul.f32 %v912_v34, %v2058_v29  ;;  %v923_v39 = vmul.f32 %v2083_v36, %v2056_v28  ;;  %v963_v57 = vmul.f32 %v912_v34, %v2031_v12  ;;  %v969_v1 = vmul.f32 %v2083_v36, %v2031_v12 }
 0xb5c   :  { %916 = vrot.lane.b32.xlu1 %v914_v38, %s1856_s23  ;;  %925 = vrot.lane.b32.xlu0 %v923_v39, %s1857_s25 }
 0xb5d   :  { %v2102_v40 = vpop.permute.xlu1 %886  ;;  %v2114_v42 = vpop.permute.xlu0 %891 }
 0xb5e   :  { %v889_v2 = vmul.f32 %v2102_v40, %v2056_v28  ;;  %v894_v3 = vmul.f32 %v2114_v42, %v2058_v29 }
 0xb60   :  { %1110 = vrot.lane.b32.xlu1 %v2058_v29, %s1858_s26  ;;  %1164 = vrot.lane.b32.xlu0 %v2056_v28, %s1855_s22  ;;  %v895_v5 = vsub.f32 %v889_v2, %v894_v3 }
 0xb61   :  { %v2112_v41 = vpop.permute.xlu1 %896  ;;  %v1065_v46 = vpop.permute.xlu0 %1064 }
 0xb62   :  { %v2133_v50 = vmul.f32 %v1065_v46, %v2031_v12  ;;  %v899_v4 = vmul.f32 %v2112_v41, %v2051_v23 }
 0xb64   :  { %1178 = vrot.lane.b32.xlu1 %v2051_v23, %s1859_s2  ;;  %979 = vrot.lane.b32.xlu0 %v2056_v28, %s1858_s26  ;;  %v900_v7 = vadd.f32 %v899_v4, %v895_v5 }
 0xb65   :  { %v1056_v45 = vpop.permute.xlu1 %1055  ;;  %v2127_v49 = vpop.permute.xlu0 %934 }
 0xb66   :  { %v1058_v48 = vmul.f32 %v1056_v45, %v2031_v12  ;;  %v2146_v58 = vmul.f32 %v2127_v49, %v2031_v12 }
 0xb68   :  { %992 = vrot.lane.b32.xlu1 %v2056_v28, %s1853_s20  ;;  %1009 = vrot.lane.b32.xlu0 %v2058_v29, %s1859_s2 }
 0xb69   :  { %v1076_v47 = vpop.permute.xlu1 %1075  ;;  %v1102_v53 = vpop.permute.xlu0 %1101 }
 0xb6a   :  { %v1078_v51 = vmul.f32 %v1076_v47, %v2031_v12  ;;  %v1104_v60 = vmul.f32 %v1102_v53, %v2031_v12 }
 0xb6c   :  { %1018 = vrot.lane.b32.xlu1 %v2056_v28, %s1852_s19  ;;  %1032 = vrot.lane.b32.xlu0 %v2051_v23, %s1857_s25 }
 0xb6d   :  { %v1085_v52 = vpop.permute.xlu1 %1084  ;;  %v984_v59 = vpop.permute.xlu0 %983 }
 0xb6e   :  { %v1087_v56 = vmul.f32 %v1085_v52, %v2031_v12  ;;  %v986_v61 = vmul.f32 %v984_v59, %v2031_v12  ;;  %v2224_v59 = vsub.f32 0.0, %v2031_v12 }
 0xb70   :  { %1041 = vrot.lane.b32.xlu1 %v2058_v29, %s1856_s23  ;;  %938 = vrot.lane.b32.xlu0 %v2058_v29, %s1860_s27 }
 0xb71   :  { %v1156_v62 = vpop.permute.xlu1 %1155 }
 0xb72   :  { %v1158_v63 = vmul.f32 %v1156_v62, %v2031_v12 }
 0xb74   :  { %1123 = vrot.lane.b32.xlu1 %v2051_v23, %s1860_s27  ;;  %1132 = vrot.lane.b32.xlu0 %v2056_v28, %s1856_s23 }
 0xb78   :  { %1097 = vrot.lane.b32.xlu1 %v2056_v28, %s1861_s28  ;;  %947 = vrot.lane.b32.xlu0 %v2056_v28, %s1857_s25 }
 0xb7c   :  { %1005 = vrot.lane.b32.xlu1 %v2056_v28, %s1862_s1  ;;  %1174 = vrot.lane.b32.xlu0 %v2058_v29, %s1862_s1 }
 0xb80   :  { %1336 = vrot.lane.b32.xlu1 %v2005_v43, %s1846_s13  ;;  %1327 = vrot.lane.b32.xlu0 %v2005_v43, %s1863_s29 }
 0xb84   :  { %1290 = vrot.lane.b32.xlu1 %v2005_v43, %s1864_s0  ;;  %1060 = vrot.lane.b32.xlu0 %v1058_v48, %s1857_s25 }
 0xb88   :  { %1080 = vrot.lane.b32.xlu0 %v1078_v51, %s1857_s25  ;;  %1069 = vrot.lane.b32.xlu1 %v2133_v50, %s1860_s27 }
 0xb8c   :  { %1089 = vrot.lane.b32.xlu0 %v1087_v56, %s1860_s27  ;;  %1145 = vrot.lane.b32.xlu1 %v1143_v54, %s1856_s23 }
 0xb90   :  { %965 = vrot.lane.b32.xlu1 %v963_v57, %s1856_s23  ;;  %1150 = vrot.lane.b32.xlu0 %v2146_v58, %s1860_s27 }
 0xb94   :  { %1106 = vrot.lane.b32.xlu1 %v1104_v60, %s1857_s25  ;;  %988 = vrot.lane.b32.xlu0 %v986_v61, %s1856_s23 }
 0xb98   :  { %1160 = vrot.lane.b32.xlu1 %v1158_v63, %s1856_s23 }
 0xb9c   :  { %971 = vrot.lane.b32.xlu1 %v969_v1, %s1857_s25 }
 0xbca   :  { %v908_v6 = vpop.permute.xlu0 %907 }
 0xbcb   :  { %v910_v8 = vadd.f32 %v908_v6, %v900_v7  ;;  %v1054_v7 = vmul.f32 %v2102_v40, %v2031_v12 }
 0xbce   :  { %v917_v9 = vpop.permute.xlu1 %916  ;;  %v926_v10 = vpop.permute.xlu0 %925 }
 0xbcf   :  { %v919_v0 = vsub.f32 %v910_v8, %v917_v9 }
 0xbd1   :  { %v2166_v13 = vadd.f32 %v926_v10, %v919_v0 }
 0xbd2   :  { %v1111_v14 = vpop.permute.xlu1 %1110  ;;  %v1165_v15 = vpop.permute.xlu0 %1164 }
 0xbd3   :  { %v929_v16 = vmax.f32 %v2166_v13, 1e-14  ;;  %v2170_v17 = vmul.f32 %v1111_v14, %v2031_v12  ;;  %v1167_v18 = vmul.f32 %v1165_v15, %v2031_v12  ;;  %v1142_v14 = vmul.f32 %v2224_v59, %v2114_v42 }
 0xbd4   :  { %v1197_v42 = vmul.f32 %v2112_v41, %v2031_v12 }
 0xbd5   :  { %1115 = vrot.lane.b32.xlu1 %v2170_v17, %s1860_s27  ;;  %1169 = vrot.lane.b32.xlu0 %v1167_v18, %s1860_s27  ;;  %1762 = vrcp.f32 %v929_v16 }
 0xbd6   :  { %v1179_v19 = vpop.permute.xlu1 %1178  ;;  %v2178_v20 = vpop.permute.xlu0 %979  ;;  %1764 = vlog2.f32 %v929_v16 }
 0xbd7   :  { %v1181_v21 = vmul.f32 %v1179_v19, %v2031_v12  ;;  %v2188_v28 = vmul.f32 %v2178_v20, %v2031_v12 }
 0xbd9   :  { %1183 = vrot.lane.b32.xlu1 %v1181_v21, %s1856_s23 }
 0xbda   :  { %v993_v22 = vpop.permute.xlu1 %992  ;;  %v1010_v23 = vpop.permute.xlu0 %1009 }
 0xbdb   :  { %v995_v24 = vmul.f32 %v993_v22, %v2031_v12  ;;  %v1012_v25 = vmul.f32 %v1010_v23, %v2031_v12 }
 0xbdd   :  { %997 = vrot.lane.b32.xlu1 %v995_v24, %s1857_s25  ;;  %1014 = vrot.lane.b32.xlu0 %v1012_v25, %s1856_s23 }
 0xbde   :  { %v1019_v26 = vpop.permute.xlu1 %1018  ;;  %v1033_v27 = vpop.permute.xlu0 %1032 }
 0xbdf   :  { %v1021_v34 = vmul.f32 %v1019_v26, %v2031_v12  ;;  %v1035_v60 = vmul.f32 %v1033_v27, %v2031_v12  ;;  %v1074_v61 = vmul.f32 %v1019_v26, %v2224_v59  ;;  %v962_v26 = vmul.f32 %v2224_v59, %v2112_v41 }
 0xbe1   :  { %1188 = vrot.lane.b32.xlu0 %v2188_v28, %s1860_s27 }
 0xbe2   :  { %v1042_v29 = vpop.permute.xlu1 %1041  ;;  %v939_v31 = vpop.permute.xlu0 %938 }
 0xbe3   :  { %v2192_v33 = vpop.eup %1762  ;;  %v1044_v51 = vmul.f32 %v1042_v29, %v2031_v12  ;;  %v941_v54 = vmul.f32 %v939_v31, %v2031_v12 }
 0xbe4   :  { %1119 = vrot.lane.b32.xlu1 %v2192_v33, %s1822_s24  ;;  %v1765_v13 = vpop.eup %1764 }
 0xbe5   :  { %1023 = vrot.lane.b32.xlu0 %v1021_v34, %s1857_s25  ;;  %v931_v16 = vmul.f32 0.6931472, %v1765_v13 }
 0xbe6   :  { %v1124_v38 = vpop.permute.xlu1 %1123  ;;  %v1133_v39 = vpop.permute.xlu0 %1132 }
 0xbe7   :  { %v1135_v62 = vmul.f32 %v1133_v39, %v2031_v12  ;;  %v1126_v2 = vmul.f32 %v1124_v38, %v2031_v12 }
 0xbe8   :  { %1001 = vrot.lane.b32.xlu1 %v2192_v33, %s1854_s21 }
 0xbe9   :  { %1093 = vrot.lane.b32.xlu0 %v2192_v33, %s1834_s6  ;;  %s1866_s6 = smov 114  }
 0xbea   :  { %v1098_v45 = vpop.permute.xlu1 %1097  ;;  %v948_v46 = vpop.permute.xlu0 %947 }
 0xbeb   :  { %v950_v6 = vmul.f32 %v948_v46, %v2031_v12  ;;  %v1100_v18 = vmul.f32 %v1098_v45, %v2031_v12 }
 0xbec   :  { %1027 = vrot.lane.b32.xlu1 %v2192_v33, %s1859_s2 }
 0xbed   :  { %1295 = vrot.lane.b32.xlu0 %v2005_v43, %s1840_s7  ;;  %s1867_s7 = smov 5  }
 0xbee   :  { %v2206_v47 = vpop.permute.xlu1 %1005  ;;  %v2208_v48 = vpop.permute.xlu0 %1174 }
 0xbf0   :  { %1313 = vrot.lane.b32.xlu1 %v2005_v43, %s1851_s18 }
 0xbf1   :  { %975 = vrot.lane.b32.xlu0 %v2192_v33, %s1845_s12 }
 0xbf2   :  { %v2215_v52 = vpop.permute.xlu1 %1336  ;;  %v1328_v53 = vpop.permute.xlu0 %1327 }
 0xbf4   :  { %1046 = vrot.lane.b32.xlu1 %v1044_v51, %s1860_s27 }
 0xbf5   :  { %1304 = vrot.lane.b32.xlu0 %v2005_v43, %s1848_s15 }
 0xbf6   :  { %v2221_v56 = vpop.permute.xlu1 %1290  ;;  %v1061_v57 = vpop.permute.xlu0 %1060 }
 0xbf7   :  { %v1063_v9 = vsub.f32 %v1054_v7, %v1061_v57 }
 0xbf8   :  { %943 = vrot.lane.b32.xlu1 %v941_v54, %s1856_s23 }
 0xbf9   :  { %1037 = vrot.lane.b32.xlu0 %v1035_v60, %s1857_s25 }
 0xbfa   :  { %v1070_v63 = vpop.permute.xlu1 %1069  ;;  %v1081_v1 = vpop.permute.xlu0 %1080 }
 0xbfb   :  { %v2232_v3 = vadd.f32 %v1081_v1, %v1074_v61  ;;  %v1072_v0 = vadd.f32 %v1070_v63, %v1063_v9 }
 0xbfc   :  { %1137 = vrot.lane.b32.xlu1 %v1135_v62, %s1860_s27 }
 0xbfd   :  { %1128 = vrot.lane.b32.xlu0 %v1126_v2, %s1856_s23  ;;  %v2249_v21 = vmul.f32 %v2192_v33, %v1072_v0  ;;  %v1201_v2 = vmul.f32 %v2178_v20, %v2224_v59 }
 0xbfe   :  { %v1146_v4 = vpop.permute.xlu1 %1145  ;;  %v1090_v5 = vpop.permute.xlu0 %1089 }
 0xbff   :  { %v1092_v8 = vsub.f32 %v2232_v3, %v1090_v5  ;;  %v1148_v40 = vadd.f32 %v1146_v4, %v1142_v14  ;;  %v1330_v25 = vmul.f32 %v1328_v53, %v2249_v21 }
 0xc00   :  { %1322 = vrot.lane.b32.xlu1 %v2005_v43, %s1841_s8  ;;  %s1868_s8 = smov 113  }
 0xc01   :  { %952 = vrot.lane.b32.xlu0 %v950_v6, %s1857_s25  ;;  %v1177_v6 = vmul.f32 %v2208_v48, %v2224_v59 }
 0xc02   :  { %v966_v10 = vpop.permute.xlu1 %965  ;;  %v1151_v15 = vpop.permute.xlu0 %1150 }
 0xc03   :  { %v1153_v22 = vsub.f32 %v1148_v40, %v1151_v15  ;;  %v968_v31 = vadd.f32 %v966_v10, %v962_v26  ;;  %v1198_v34 = vsub.f32 %v1197_v42, %v966_v10  ;;  %v1205_v15 = vmul.f32 %v2206_v47, %v2031_v12 }
 0xc04   :  { %1412 = vrot.lane.b32.xlu1 %v2005_v43, %s1865_s30 }
 0xc05   :  { %1421 = vrot.lane.b32.xlu0 %v2005_v43, %s1866_s6  ;;  %v2261_v27 = vmul.f32 %v2192_v33, %v1153_v22 }
 0xc06   :  { %v1107_v19 = vpop.permute.xlu1 %1106  ;;  %v989_v54 = vpop.permute.xlu0 %988 }
 0xc07   :  { %v1109_v23 = vsub.f32 %v1100_v18, %v1107_v19  ;;  %v1353_v39 = vmul.f32 %v1328_v53, %v2261_v27  ;;  %v1202_v5 = vadd.f32 %v1201_v2, %v989_v54 }
 0xc08   :  { %957 = vrot.lane.b32.xlu1 %v2192_v33, %s1867_s7 }
 0xc09   :  { %1050 = vrot.lane.b32.xlu0 %v2192_v33, %s1825_s3 }
 0xc0a   :  { %v1161_v24 = vpop.permute.xlu1 %1160 }
 0xc0b   :  { %v1163_v29 = vsub.f32 %v2170_v17, %v1161_v24 }
 0xc0d   :  { %1332 = vrot.lane.b32.xlu0 %v1330_v25, %s1825_s3 }
 0xc0e   :  { %v972_v38 = vpop.permute.xlu1 %971 }
 0xc0f   :  { %v974_v45 = vsub.f32 %v968_v31, %v972_v38  ;;  %v1199_v46 = vadd.f32 %v1198_v34, %v972_v38  ;;  %v991_v38 = vsub.f32 %v2188_v28, %v989_v54 }
 0xc11   :  { %v2267_v51 = vmul.f32 %v2192_v33, %v1199_v46  ;;  %1355 = vrot.lane.b32.xlu0 %v1353_v39, %s1825_s3  ;;  %v1008_v39 = vmul.f32 %v2206_v47, %v2224_v59 }
 0xc13   :  { %v1373_v41 = vmul.f32 %v1328_v53, %v2267_v51 }
 0xc15   :  { %1375 = vrot.lane.b32.xlu0 %v1373_v41, %s1825_s3 }
 0xc47   :  { %v1116_v17 = vpop.permute.xlu1 %1115  ;;  %v1170_v57 = vpop.permute.xlu0 %1169 }
 0xc48   :  { %v1118_v1 = vadd.f32 %v1116_v17, %v1109_v23  ;;  %v1172_v10 = vadd.f32 %v1170_v57, %v1163_v29 }
 0xc4b   :  { %v1184_v60 = vpop.permute.xlu1 %1183 }
 0xc4c   :  { %v1186_v0 = vadd.f32 %v1184_v60, %v1177_v6 }
 0xc4f   :  { %v1015_v61 = vpop.permute.xlu0 %1014  ;;  %v998_v62 = vpop.permute.xlu1 %997 }
 0xc50   :  { %v1203_v7 = vsub.f32 %v1202_v5, %v998_v62  ;;  %v1206_v23 = vsub.f32 %v1205_v15, %v1015_v61  ;;  %v1017_v17 = vadd.f32 %v1015_v61, %v1008_v39 }
 0xc53   :  { %v1189_v63 = vpop.permute.xlu0 %1188 }
 0xc54   :  { %v1191_v18 = vsub.f32 %v1186_v0, %v1189_v63 }
 0xc56   :  { %v1120_v3 = vpop.permute.xlu1 %1119 }
 0xc57   :  { %v2274_v33 = vmul.f32 %v1120_v3, %v1118_v1  ;;  %v1024_v4 = vpop.permute.xlu0 %1023 }
 0xc58   :  { %v1207_v42 = vadd.f32 %v1206_v23, %v1024_v4  ;;  %v1026_v28 = vsub.f32 %v1017_v17, %v1024_v4  ;;  %v1031_v4 = vmul.f32 %v2224_v59, %v2083_v36 }
 0xc59   :  { %v1345_v53 = vmul.f32 %v2221_v56, %v2274_v33 }
 0xc5a   :  { %v1002_v24 = vpop.permute.xlu1 %1001  ;;  %v2304_v31 = vmul.f32 %v1207_v42, %v1120_v3  ;;  %v1193_v42 = vmul.f32 %v2224_v59, %v2127_v49 }
 0xc5b   :  { %1347 = vrot.lane.b32.xlu0 %v1345_v53, %s1843_s10  ;;  %v1094_v9 = vpop.permute.xlu0 %1093 }
 0xc5c   :  { %v2281_v14 = vmul.f32 %v1094_v9, %v1092_v8  ;;  %v2283_v20 = vmul.f32 %v1203_v7, %v1094_v9  ;;  %v2287_v40 = vmul.f32 %v1172_v10, %v1094_v9  ;;  %v2295_v8 = vmul.f32 %v1191_v18, %v1120_v3 }
 0xc5d   :  { %v1385_v46 = vmul.f32 %v2221_v56, %v2304_v31 }
 0xc5e   :  { %v1339_v19 = vmul.f32 %v2215_v52, %v2281_v14  ;;  %v1379_v48 = vmul.f32 %v2215_v52, %v2283_v20  ;;  %v1359_v12 = vmul.f32 %v2215_v52, %v2287_v40  ;;  %v1365_v29 = vmul.f32 %v2221_v56, %v2295_v8  ;;  %v1028_v52 = vpop.permute.xlu1 %1027 }
 0xc5f   :  { %v1296_v22 = vpop.permute.xlu0 %1295  ;;  %v2319_v63 = vmul.f32 %v1028_v52, %v1026_v28 }
 0xc60   :  { %1381 = vrot.lane.b32.xlu0 %v1379_v48, %s1842_s9  ;;  %1341 = vrot.lane.b32.xlu1 %v1339_v19, %s1842_s9 }
 0xc62   :  { %v1314_v60 = vpop.permute.xlu1 %1313 }
 0xc63   :  { %v976_v25 = vpop.permute.xlu0 %975  ;;  %v1316_v47 = vmul.f32 %v1314_v60, %v2319_v63 }
 0xc64   :  { %v2299_v26 = vmul.f32 %v976_v25, %v974_v45  ;;  %1361 = vrot.lane.b32.xlu1 %v1359_v12, %s1842_s9  ;;  %v1000_v45 = vadd.f32 %v998_v62, %v991_v38 }
 0xc66   :  { %v1298_v34 = vmul.f32 %v1296_v22, %v2299_v26  ;;  %v2314_v57 = vmul.f32 %v1002_v24, %v1000_v45  ;;  %v1047_v1 = vpop.permute.xlu1 %1046 }
 0xc67   :  { %v1305_v41 = vpop.permute.xlu0 %1304 }
 0xc68   :  { %1367 = vrot.lane.b32.xlu1 %v1365_v29, %s1843_s10  ;;  %1300 = vrot.lane.b32.xlu0 %v1298_v34, %s1825_s3  ;;  %v1307_v54 = vmul.f32 %v1305_v41, %v2314_v57 }
 0xc6a   :  { %v944_v3 = vpop.permute.xlu1 %943 }
 0xc6b   :  { %v1038_v61 = vpop.permute.xlu0 %1037  ;;  %v1194_v24 = vadd.f32 %v1193_v42, %v944_v3  ;;  %v946_v28 = vsub.f32 %v2146_v58, %v944_v3 }
 0xc6c   :  { %1387 = vrot.lane.b32.xlu1 %v1385_v46, %s1843_s10  ;;  %1430 = vrot.lane.b32.xlu0 %v2005_v43, %s1868_s8  ;;  %v1040_v9 = vadd.f32 %v1038_v61, %v1031_v4 }
 0xc6e   :  { %v1138_v53 = vpop.permute.xlu1 %1137  ;;  %v1049_v10 = vsub.f32 %v1040_v9, %v1047_v1 }
 0xc6f   :  { %v1129_v62 = vpop.permute.xlu0 %1128 }
 0xc70   :  { %1309 = vrot.lane.b32.xlu1 %v1307_v54, %s1842_s9  ;;  %v1131_v19 = vsub.f32 %v2133_v50, %v1129_v62  ;;  %s1869_s9 = smov 20  }
 0xc72   :  { %v1323_v6 = vpop.permute.xlu1 %1322  ;;  %v1140_v12 = vadd.f32 %v1138_v53, %v1131_v19 }
 0xc73   :  { %v953_v2 = vpop.permute.xlu0 %952 }
 0xc74   :  { %1318 = vrot.lane.b32.xlu1 %v1316_v47, %s1843_s10  ;;  %v1195_v38 = vsub.f32 %v1194_v24, %v953_v2  ;;  %v955_v61 = vadd.f32 %v953_v2, %v946_v28 }
 0xc76   :  { %v1413_v0 = vpop.permute.xlu1 %1412 }
 0xc77   :  { %v1422_v5 = vpop.permute.xlu0 %1421 }
 0xc7a   :  { %v958_v22 = vpop.permute.xlu1 %957 }
 0xc7b   :  { %v1051_v43 = vpop.permute.xlu0 %1050  ;;  %v960_v53 = vmul.f32 %v958_v22, %v955_v61 }
 0xc7c   :  { %v2326_v18 = vmul.f32 %v1051_v43, %v1049_v10  ;;  %v1141_v36 = vmul.f32 %v1140_v12, %v1051_v43  ;;  %v1196_v39 = vmul.f32 %v1195_v38, %v1051_v43 }
 0xc7d   :  { %v1293_v58 = vmul.f32 %v2221_v56, %v960_v53 }
 0xc7e   :  { %v1325_v48 = vmul.f32 %v1323_v6, %v2326_v18  ;;  %v1351_v45 = vmul.f32 %v1323_v6, %v1141_v36  ;;  %v1371_v54 = vmul.f32 %v1323_v6, %v1196_v39 }
 0xc7f   :  { %v1333_v7 = vpop.permute.xlu0 %1332 }
 0xc80   :  { %v1335_v25 = vadd.f32 %v1333_v7, %v1325_v48 }
 0xc83   :  { %v1356_v15 = vpop.permute.xlu0 %1355 }
 0xc84   :  { %v1358_v17 = vadd.f32 %v1356_v15, %v1351_v45 }
 0xc87   :  { %v1376_v23 = vpop.permute.xlu0 %1375 }
 0xc88   :  { %v1378_v62 = vadd.f32 %v1376_v23, %v1371_v54 }
 0xccd   :  { %v1348_v29 = vpop.permute.xlu0 %1347 }
 0xcd2   :  { %v1342_v34 = vpop.permute.xlu1 %1341  ;;  %v1382_v41 = vpop.permute.xlu0 %1381 }
 0xcd3   :  { %v1344_v52 = vadd.f32 %v1342_v34, %v1335_v25  ;;  %v1384_v43 = vadd.f32 %v1382_v41, %v1378_v62 }
 0xcd5   :  { %v1350_v46 = vadd.f32 %v1348_v29, %v1344_v52 }
 0xcd6   :  { %v1362_v50 = vpop.permute.xlu1 %1361 }
 0xcd7   :  { %1396 = vrot.lane.b32.xlu0 %v1350_v46, %s1860_s27  ;;  %v1415_v49 = vmul.f32 %v1413_v0, %v1350_v46  ;;  %v1364_v59 = vadd.f32 %v1362_v50, %v1358_v17 }
 0xcda   :  { %v1368_v60 = vpop.permute.xlu1 %1367  ;;  %v1301_v47 = vpop.permute.xlu0 %1300 }
 0xcdb   :  { %v1370_v1 = vadd.f32 %v1368_v60, %v1364_v59  ;;  %1417 = vrot.lane.b32.xlu0 %v1415_v49, %s1845_s12  ;;  %v1303_v0 = vadd.f32 %v1301_v47, %v1293_v58 }
 0xcdd   :  { %v1424_v4 = vmul.f32 %v1422_v5, %v1370_v1 }
 0xcde   :  { %v1388_v7 = vpop.permute.xlu1 %1387  ;;  %v2336_v10 = vpop.permute.xlu0 %1430 }
 0xcdf   :  { %v1390_v9 = vadd.f32 %v1388_v7, %v1384_v43  ;;  %1426 = vrot.lane.b32.xlu1 %v1424_v4, %s1845_s12 }
 0xce1   :  { %v1433_v3 = vmul.f32 %v2336_v10, %v1390_v9 }
 0xce2   :  { %v1310_v6 = vpop.permute.xlu1 %1309 }
 0xce3   :  { %1435 = vrot.lane.b32.xlu0 %v1433_v3, %s1845_s12  ;;  %v1312_v2 = vadd.f32 %v1310_v6, %v1303_v0 }
 0xce6   :  { %v1319_v15 = vpop.permute.xlu1 %1318 }
 0xce7   :  { %v1321_v19 = vadd.f32 %v1319_v15, %v1312_v2  ;;  %1404 = vrot.lane.b32.xlu0 %v1390_v9, %s1856_s23 }
 0xce9   :  { %1392 = vrot.lane.b32.xlu1 %v1321_v19, %s1848_s15 }
 0xceb   :  { %1214 = vrot.lane.b32.xlu0 %v2314_v57, %s1864_s0 }
 0xced   :  { %1400 = vrot.lane.b32.xlu1 %v1370_v1, %s1857_s25 }
 0xcef   :  { %1222 = vrot.lane.b32.xlu0 %v2249_v21, %s1867_s7  ;;  %v1442_v21 = vadd.f32 7.351508, %v931_v16 }
 0xcf1   :  { %1210 = vrot.lane.b32.xlu1 %v960_v53, %s1848_s15 }
 0xcf3   :  { %1230 = vrot.lane.b32.xlu0 %v2274_v33, %s1856_s23 }
 0xcf5   :  { %1218 = vrot.lane.b32.xlu1 %v2319_v63, %s1846_s13 }
 0xcf7   :  { %1238 = vrot.lane.b32.xlu0 %v2261_v27, %s1859_s2  ;;  %v1443_v27 = vmul.f32 0.5, %v1442_v21 }
 0xcf9   :  { %1226 = vrot.lane.b32.xlu1 %v2281_v14, %s1846_s13 }
 0xcfb   :  { %1246 = vrot.lane.b32.xlu0 %v2295_v8, %s1844_s11 }
 0xcfd   :  { %1234 = vrot.lane.b32.xlu1 %v1141_v36, %s1825_s3 }
 0xcff   :  { %1254 = vrot.lane.b32.xlu0 %v2267_v51, %s1854_s21  ;;  %v1410_v51 = vmul.f32 %v1321_v19, %v2221_v56  ;;  %v780_v56 = vmul.f32 0.125, %v2001_v35 }
 0xd01   :  { %1242 = vrot.lane.b32.xlu1 %v2287_v40, %s1857_s25  ;;  %v1439_v50 = vmax.f32 %v780_v56, 1e-12 }
 0xd03   :  { %1262 = vrot.lane.b32.xlu0 %v2304_v31, %s1862_s1  ;;  %1766 = vlog2.f32 %v1439_v50 }
 0xd05   :  { %1250 = vrot.lane.b32.xlu1 %v1196_v39, %s1822_s24  ;;  %s1870_s24 = smov 108  }
 0xd09   :  { %1258 = vrot.lane.b32.xlu1 %v2283_v20, %s1847_s14 }
 0xd0d   :  { %1445 = vrot.lane.b32.xlu1 %v1443_v27, %s1869_s9 }
 0xd10   :  { %v1767_v43 = vpop.eup %1766 }
 0xd11   :  { %v1441_v3 = vmul.f32 0.6931472, %v1767_v43 }
 0xd49   :  { %v1397_v33 = vpop.permute.xlu0 %1396 }
 0xd4d   :  { %v1418_v14 = vpop.permute.xlu0 %1417 }
 0xd4e   :  { %v1420_v57 = vadd.f32 %v1418_v14, %v1410_v51 }
 0xd51   :  { %v1427_v8 = vpop.permute.xlu1 %1426 }
 0xd52   :  { %v1429_v40 = vadd.f32 %v1427_v8, %v1420_v57 }
 0xd55   :  { %v1436_v63 = vpop.permute.xlu0 %1435 }
 0xd56   :  { %v1438_v5 = vadd.f32 %v1436_v63, %v1429_v40  ;;  %v434_v63 = vmul.f32 %v1951_v37, %v1951_v37 }
 0xd58   :  { %v1450_v48 = vmul.f32 0.5, %v1438_v5  ;;  %v1774_v5 = vld [vmem:[#allocation2] sm:$0xff] }
 0xd59   :  { %v1405_v23 = vpop.permute.xlu0 %1404 }
 0xd5a   :  { %1452 = vrot.lane.b32.xlu0 %v1450_v48, %s1855_s22  ;;  %v430_v48 = vmul.f32 %v1774_v5, %v1951_v37 }
 0xd5b   :  { %v1393_v31 = vpop.permute.xlu1 %1392 }
 0xd5c   :  { %v1407_v22 = vsel %vm1265_vm3, %v1393_v31, %v1397_v33  ;;  %v431_v31 = vsel %vm70_vm2, %v430_v48, 0.0 }
 0xd5d   :  { %v1215_v36 = vpop.permute.xlu0 %1214 }
 0xd5f   :  { %v1401_v20 = vpop.permute.xlu1 %1400 }
 0xd60   :  { %v1408_v42 = vsel %vm243_vm5, %v1407_v22, %v1401_v20 }
 0xd61   :  { %v1409_v12 = vsel %vm443_vm9, %v1408_v42, %v1405_v23  ;;  %v1223_v29 = vpop.permute.xlu0 %1222 }
 0xd62   :  { %1457 = vrot.lane.b32.xlu1 %v1409_v12, %s1833_s5 }
 0xd63   :  { %v1211_v24 = vpop.permute.xlu1 %1210 }
 0xd64   :  { %v1266_v34 = vsel %vm1265_vm3, %v1211_v24, %v2299_v26 }
 0xd65   :  { %v1267_v52 = vsel %vm243_vm5, %v1266_v34, %v1215_v36  ;;  %v1231_v45 = vpop.permute.xlu0 %1230  ;;  %vm1277_vm5 = vcmask 72704  }
 0xd66   :  { %1564 = vrot.lane.b32.xlu1 %v780_v56, %s1870_s24 }
 0xd67   :  { %v1219_v25 = vpop.permute.xlu1 %1218 }
 0xd68   :  { %v1268_v39 = vsel %vm443_vm9, %v1267_v52, %v1219_v25 }
 0xd69   :  { %v1269_v35 = vsel %vm49_vm1, %v1268_v39, %v2326_v18  ;;  %v1239_v41 = vpop.permute.xlu0 %1238 }
 0xd6a   :  { %1568 = vrot.lane.b32.xlu1 %v2028_v11, %s1867_s7  ;;  %v1271_v11 = vsel %vm1270_vm4, %v1269_v35, %v1223_v29 }
 0xd6b   :  { %v1227_v38 = vpop.permute.xlu1 %1226 }
 0xd6c   :  { %v1273_v17 = vsel %vm1272_vm6, %v1271_v11, %v1227_v38 }
 0xd6d   :  { %v1275_v26 = vsel %vm1274_vm7, %v1273_v17, %v1231_v45  ;;  %v1247_v54 = vpop.permute.xlu0 %1246 }
 0xd6f   :  { %v1235_v46 = vpop.permute.xlu1 %1234 }
 0xd70   :  { %v1276_v49 = vsel %vm656_vm10, %v1275_v26, %v1235_v46  ;;  %vm1462_vm10 = vcmask 171008  }
 0xd71   :  { %v1278_v18 = vsel %vm1277_vm5, %v1276_v49, %v1239_v41  ;;  %v1255_v47 = vpop.permute.xlu0 %1254 }
 0xd73   :  { %v1243_v28 = vpop.permute.xlu1 %1242 }
 0xd74   :  { %v1280_v60 = vsel %vm1279_vm8, %v1278_v18, %v1243_v28 }
 0xd75   :  { %v1282_v61 = vsel %vm1281_vm13, %v1280_v60, %v1247_v54  ;;  %v1263_v4 = vpop.permute.xlu0 %1262 }
 0xd77   :  { %v1251_v59 = vpop.permute.xlu1 %1250 }
 0xd78   :  { %v1283_v62 = vsel %vm658_vm11, %v1282_v61, %v1251_v59  ;;  %vm1574_vm11 = vcmask 1042432  }
 0xd79   :  { %v1285_v53 = vsel %vm1284_vm14, %v1283_v62, %v1255_v47 }
 0xd7b   :  { %v1259_v1 = vpop.permute.xlu1 %1258 }
 0xd7c   :  { %v1287_v7 = vsel %vm1286_vm15, %v1285_v53, %v1259_v1 }
 0xd7d   :  { %v1289_v58 = vsel %vm1288_vm0, %v1287_v7, %v1263_v4 }
 0xd7e   :  { %v1449_v2 = vmul.f32 -0.5, %v1289_v58 }
 0xd7f   :  { %v1446_v9 = vpop.permute.xlu1 %1445 }
 0xd80   :  { %v1448_v0 = vsub.f32 %v1441_v3, %v1446_v9 }
 0xdcc   :  { %v1453_v6 = vpop.permute.xlu0 %1452 }
 0xdcd   :  { %v1455_v15 = vsub.f32 %v1448_v0, %v1453_v6 }
 0xdd4   :  { %v1458_v19 = vpop.permute.xlu1 %1457 }
 0xdd5   :  { %v1460_v13 = vsel %vm70_vm2, %v1449_v2, %v1458_v19 }
 0xdd6   :  { %v1461_v16 = vsel %vm664_vm12, %v1460_v13, %v1455_v15 }
 0xdd7   :  { %1678 = vmatpush3.xpose.msk.msra.mxu1 %vm1462_vm10, %v1461_v16 }
 0xdd8   :  { %v1565_v21 = vpop.permute.xlu1 %1564 }
 0xdd9   :  { %v1571_v27 = vsel %vm1265_vm3, %v1565_v21, %v2336_v10  ;;  %v435_v10 = vsel %vm70_vm2, %v434_v63, 0.0 }
 0xdda   :  { %1680 = vmatmul.mubr.msk.f32.vlgmr.msra.gmra.mxu1 %vm1462_vm10, %v1994_v30 }
 0xddc   :  { %v1569_v33 = vpop.permute.xlu1 %1568 }
 0xddd   :  { %v1572_v14 = vsel %vm1270_vm4, %v1571_v27, %v1569_v33 }
 0xdde   :  { %v1573_v51 = vsel %vm1462_vm10, %v1572_v14, 0.0 }
 0xddf   :  { %v1575_v8 = vsel %vm1574_vm11, %v1573_v51, 0.0 }
 0xde0   :  { %1577 = vst [vmem:[%s2422_s4 + $0x8] sm:$0xff] %v1575_v8 }
 0xe9a   :  { %v1535_v57 = vpop.f32.mrf.mxu1 }
 0xe9b   :  { %v1539_v40 = vsel %vm443_vm9, %v1535_v57, -inf }
 0xe9c   :  { %1540 = vmax.xlane.f32.xlu0 %v1539_v40  ;;  %v1681_v30 = vpop.f32.mrf.mxu1 }
 0xea0   :  { %436 = vadd.xlane.f32.xlu0 %v435_v10 }
 0xea4   :  { %432 = vadd.xlane.f32.xlu0 %v431_v31 }
 0xeba   :  { %1553 = vrot.lane.b32.xlu0 %v1997_v32, %s1845_s12 }
 0xf25   :  { %v1541_v22 = vpop.xlane.xlu0 %1540 }
 0xf26   :  { %v1542_v20 = vsub.f32 %v1535_v57, %v1541_v22 }
 0xf28   :  { %v1543_v23 = vmul.f32 1.442695, %v1542_v20 }
 0xf29   :  { %v437_v56 = vpop.xlane.xlu0 %436 }
 0xf2a   :  { %1768 = vpow2.f32 %v1543_v23  ;;  %v438_v37 = vmul.f32 %v437_v56, %v1958_v44 }
 0xf2c   :  { %v439_v24 = vmax.f32 %v438_v37, 1e-16 }
 0xf2d   :  { %v433_v32 = vpop.xlane.xlu0 %432 }
 0xf31   :  { %v1554_v45 = vpop.permute.xlu0 %1553 }
 0xf37   :  { %v1769_v42 = vpop.eup %1768 }
 0xf38   :  { %v1545_v12 = vsel %vm443_vm9, %v1769_v42, 0.0 }
 0xf39   :  { %1546 = vadd.xlane.f32.xlu1 %v1545_v12 }
 0xf4a   :  { %1556 = vrot.lane.b32.xlu1 %v1963_v55, %s1867_s7 }
 0xfc2   :  { %v1547_v36 = vpop.xlane.xlu1 %1546 }
 0xfc3   :  { %1770 = vlog2.f32 %v1547_v36 }
 0xfc4   :  { %1772 = vrsqrt.f32 %v439_v24 }
 0xfc6   :  { %v1557_v46 = vpop.permute.xlu1 %1556 }
 0xfd0   :  { %v1771_v25 = vpop.eup %1770 }
 0xfd1   :  { %v1549_v29 = vmul.f32 0.6931472, %v1771_v25  ;;  %v1773_v34 = vpop.eup %1772 }
 0xfd2   :  { %v441_v39 = vmul.f32 %v1773_v34, %v433_v32 }
 0xfd3   :  { %v1550_v38 = vadd.f32 %v1549_v29, %v1541_v22 }
 0xfd5   :  { %v1551_v52 = vsub.f32 0.0, %v1550_v38 }
 0xfd7   :  { %v1559_v35 = vsel %vm1265_vm3, %v1551_v52, %v1554_v45 }
 0xfd8   :  { %v1560_v55 = vsel %vm49_vm1, %v1559_v35, %v441_v39 }
 0xfd9   :  { %v1561_v11 = vsel %vm1270_vm4, %v1560_v55, %v1557_v46 }
 0xfda   :  { %v1562_v44 = vsel %vm1277_vm5, %v1561_v11, 0.0 }
 0xfdb   :  { %1576 = vst [vmem:[%s2422_s4] sm:$0xff] %v1562_v44 }
 0xfdc   :  { %1582 = vsyncpa [#allocation3], 1 }
 0xfdd   :  { %1583 = vsyncpa [#allocation5], 1 }

</bundles_post_ra>
